<compile_context>
chip_gen: v7x
topology: tpu7x:2x2x1
jax: 0.10.0
libtpu: 0.0.40
codegen_flags: <defaults>
</compile_context>

<pallas_src>
import jax
import jax.numpy as jnp
from jax import lax
from jax.experimental import pallas as pl
from jax.experimental.pallas import tpu as pltpu


# ---------------------------------------------------------------------------
# Kernels
# ---------------------------------------------------------------------------

def _linear_kernel(x_ref, w_ref, b_ref, o_ref):
    # o = x @ w + b   (w pre-transposed: [in, out]; b: [1, out])
    o_ref[...] = (
        jnp.dot(x_ref[...], w_ref[...], preferred_element_type=jnp.float32)
        + b_ref[...]
    )


def _dhcf_layer_kernel(h_ref, ue_ref, ie_ref, wlu_ref, blu_ref, wli_ref, bli_ref,
                       u_new_ref, i_new_ref,
                       item_msg_ref, i_acc_ref):
    """Fused DJconv layer, gridded over user tiles.

    Per grid step i (one tile of users / one row-tile of H):
      step 0      : item_msg = Ie @ W_I + b_I  -> VMEM scratch (bf16);  I_acc = 0
      every step  : user_msg = Ue_tile @ W_U + b_U
                    U_new_tile = relu(H_tile @ item_msg + Ue_tile)
                    I_acc     += H_tile^T @ user_msg      (dot_general, no transpose)
      last step   : I_new = relu(I_acc + Ie)
    """
    i = pl.program_id(0)

    @pl.when(i == 0)
    def _init():
        msg = (jnp.dot(ie_ref[...], wli_ref[...],
                       preferred_element_type=jnp.float32) + bli_ref[...])
        item_msg_ref[...] = msg.astype(jnp.bfloat16)
        i_acc_ref[...] = jnp.zeros_like(i_acc_ref)

    u_tile = ue_ref[...]                      # [tm, d]  f32
    h_tile = h_ref[...]                       # [tm, n_items]  bf16 (binary -> exact)

    # user-side message for this tile (f32 epilogue, bf16 into the big MXU matmul)
    user_msg = (jnp.dot(u_tile, wlu_ref[...],
                        preferred_element_type=jnp.float32) + blu_ref[...])

    # U' tile: relu(H_tile @ item_msg + Ue_tile)
    u_upd = jnp.dot(h_tile, item_msg_ref[...],
                    preferred_element_type=jnp.float32)
    u_new_ref[...] = jnp.maximum(u_upd + u_tile, 0.0)

    # I accumulator: += H_tile^T @ user_msg  (contract H's dim 0; no transposed copy)
    i_acc_ref[...] += lax.dot_general(
        h_tile, user_msg.astype(jnp.bfloat16),
        dimension_numbers=(((0,), (0,)), ((), ())),
        preferred_element_type=jnp.float32)

    @pl.when(i == pl.num_programs(0) - 1)
    def _finalize():
        i_new_ref[...] = jnp.maximum(i_acc_ref[...] + ie_ref[...], 0.0)


# ---------------------------------------------------------------------------
# Wrappers
# ---------------------------------------------------------------------------

def _row_tile(m):
    return 128 if (m % 128 == 0) else m


def linear(x, w, b):
    """x:[m,k] @ w:[k,n] + b:[1,n] -> [m,n], gridded over row tiles."""
    m, k = x.shape
    n = w.shape[1]
    tm = _row_tile(m)
    return pl.pallas_call(
        _linear_kernel,
        out_shape=jax.ShapeDtypeStruct((m, n), jnp.float32),
        grid_spec=pltpu.PrefetchScalarGridSpec(
            num_scalar_prefetch=0,
            grid=(m // tm,),
            in_specs=[pl.BlockSpec((tm, k), lambda i: (i, 0)),
                      pl.BlockSpec((k, n), lambda i: (0, 0)),
                      pl.BlockSpec((1, n), lambda i: (0, 0))],
            out_specs=pl.BlockSpec((tm, n), lambda i: (i, 0))),
        compiler_params=pltpu.CompilerParams(dimension_semantics=("parallel",)),
    )(x, w, b)


def dhcf_layer(H_bf16, Ue, Ie, Wlu, blu, Wli, bli):
    """One fused DJconv layer: returns (U_new [n_users,d], I_new [n_items,d])."""
    n_users, n_items = H_bf16.shape
    d = Ue.shape[1]
    tm = _row_tile(n_users)

    flops = (2 * n_items * d * d          # item message
             + 2 * n_users * d * d        # user message
             + 4 * n_users * n_items * d) # both propagation matmuls
    bytes_accessed = (H_bf16.size * 2
                      + (Ue.size + Ie.size) * 4 * 2        # read inputs + write outputs
                      + (Wlu.size + Wli.size + blu.size + bli.size) * 4)

    return pl.pallas_call(
        _dhcf_layer_kernel,
        out_shape=(jax.ShapeDtypeStruct((n_users, d), jnp.float32),
                   jax.ShapeDtypeStruct((n_items, d), jnp.float32)),
        grid_spec=pltpu.PrefetchScalarGridSpec(
            num_scalar_prefetch=0,
            grid=(n_users // tm,),
            in_specs=[
                pl.BlockSpec((tm, n_items), lambda i: (i, 0)),   # H row tile (bf16)
                pl.BlockSpec((tm, d),       lambda i: (i, 0)),   # Ue tile
                pl.BlockSpec((n_items, d),  lambda i: (0, 0)),   # Ie (resident)
                pl.BlockSpec((d, d),        lambda i: (0, 0)),   # W_U
                pl.BlockSpec((1, d),        lambda i: (0, 0)),   # b_U
                pl.BlockSpec((d, d),        lambda i: (0, 0)),   # W_I
                pl.BlockSpec((1, d),        lambda i: (0, 0)),   # b_I
            ],
            out_specs=(pl.BlockSpec((tm, d),      lambda i: (i, 0)),   # U_new tile
                       pl.BlockSpec((n_items, d), lambda i: (0, 0))),  # I_new (resident)
            scratch_shapes=[pltpu.VMEM((n_items, d), jnp.bfloat16),    # item_msg
                            pltpu.VMEM((n_items, d), jnp.float32)]),   # I accumulator
        compiler_params=pltpu.CompilerParams(
            # I_new accumulates across user tiles -> reduction axis, keep sequential.
            dimension_semantics=("arbitrary",)),
        cost_estimate=pl.CostEstimate(flops=flops, transcendentals=0,
                                      bytes_accessed=bytes_accessed),
    )(H_bf16, Ue, Ie, Wlu, blu, Wli, bli)


# ---------------------------------------------------------------------------
# DHCF model (params + glue)
# ---------------------------------------------------------------------------

def init_dhcf_params(key, U_dim, I_dim, embedding_dim=64, num_layers=1):
    def dense(k, fan_in, fan_out):
        kw, kb = jax.random.split(k)
        scale = 1.0 / jnp.sqrt(jnp.float32(fan_in))
        w = jax.random.uniform(kw, (fan_in, fan_out), jnp.float32, -scale, scale)
        b = jax.random.uniform(kb, (1, fan_out), jnp.float32, -scale, scale)
        return w, b

    keys = jax.random.split(key, 2 + 2 * num_layers)
    WU, bU = dense(keys[0], U_dim, embedding_dim)        # embed_U
    WI, bI = dense(keys[1], I_dim, embedding_dim)        # embed_I
    layers = []
    for l in range(num_layers):
        Wlu, blu = dense(keys[2 + 2 * l], embedding_dim, embedding_dim)
        Wli, bli = dense(keys[2 + 2 * l + 1], embedding_dim, embedding_dim)
        layers.append({"Wlu": Wlu, "blu": blu, "Wli": Wli, "bli": bli})
    return {"WU": WU, "bU": bU, "WI": WI, "bI": bI, "layers": layers}


@jax.jit
def dhcf_forward(params, H, U, I):
    Ue = linear(U, params["WU"], params["bU"])
    Ie = linear(I, params["WI"], params["bI"])

    # Binary incidence matrix -> exact in bf16; halves HBM bytes of the biggest tensor.
    H_bf = H.astype(jnp.bfloat16)

    U_outs = [Ue]
    I_outs = [Ie]
    for lp in params["layers"]:
        # dropout (eval mode) -> identity   # TODO(synk): training-mode dropout
        Ue, Ie = dhcf_layer(H_bf, Ue, Ie,
                            lp["Wlu"], lp["blu"], lp["Wli"], lp["bli"])
        U_outs.append(Ue)
        I_outs.append(Ie)

    # single O(L) concat (torch version concats per layer -> O(L^2) traffic)
    return jnp.concatenate(U_outs, axis=1), jnp.concatenate(I_outs, axis=1)


def dhcf_reference(params, H, U, I):
    """Pure-JAX f32 reference (same DJconv interpretation)."""
    Ue = U @ params["WU"] + params["bU"]
    Ie = I @ params["WI"] + params["bI"]
    U_outs, I_outs = [Ue], [Ie]
    for lp in params["layers"]:
        item_msg = Ie @ lp["Wli"] + lp["bli"]
        user_msg = Ue @ lp["Wlu"] + lp["blu"]
        U_new = jnp.maximum(H @ item_msg + Ue, 0.0)
        I_new = jnp.maximum(H.T @ user_msg + Ie, 0.0)
        Ue, Ie = U_new, I_new
        U_outs.append(Ue)
        I_outs.append(Ie)
    return jnp.concatenate(U_outs, axis=1), jnp.concatenate(I_outs, axis=1)


# ---------------------------------------------------------------------------
# Demo
# ---------------------------------------------------------------------------

if __name__ == "__main__":
    key = jax.random.PRNGKey(0)
    k_h, k_u, k_i, k_p = jax.random.split(key, 4)

    n_users, n_items = 256, 384
    U_dim, I_dim = 24, 40
    embedding_dim, num_layers = 128, 2     # lane-dense feature dim (multiple of 128)
    dropout = 0.5                          # unused (eval-mode identity)

    H = (jax.random.uniform(k_h, (n_users, n_items)) < 0.3).astype(jnp.float32)
    U = jax.random.normal(k_u, (n_users, U_dim), jnp.float32)
    I = jax.random.normal(k_i, (n_items, I_dim), jnp.float32)

    params = init_dhcf_params(k_p, U_dim, I_dim, embedding_dim, num_layers)

    U_out, I_out = dhcf_forward(params, H, U, I)
    jax.block_until_ready((U_out, I_out))

    assert U_out.shape == (n_users, embedding_dim * (1 + num_layers))
    assert I_out.shape == (n_items, embedding_dim * (1 + num_layers))

    # loose numerical check vs f32 reference (kernel uses bf16 H / messages on the MXU)
    U_ref, I_ref = dhcf_reference(params, H, U, I)
    for got, ref in ((U_out, U_ref), (I_out, I_ref)):
        rel_err = jnp.max(jnp.abs(got - ref)) / (jnp.max(jnp.abs(ref)) + 1e-6)
        assert float(rel_err) < 5e-2, f"relative error too large: {float(rel_err)}"

    print("KERNEL_OK")
</pallas_src>

<mosaic_0001>
module attributes {stable_mosaic.version = 11 : i64} {
  func.func @_linear_kernel(%arg0: i32, %arg1: memref<128x24xf32, #tpu.memory_space<vmem>>, %arg2: memref<24x128xf32, #tpu.memory_space<vmem>>, %arg3: memref<1x128xf32, #tpu.memory_space<vmem>>, %arg4: memref<128x128xf32, #tpu.memory_space<vmem>>) attributes {dimension_semantics = [#tpu.dimension_semantics<parallel>], iteration_bounds = array<i64: 2>, scalar_prefetch = 0 : i64, scratch_operands = 0 : i64, tpu.core_type = #tpu.core_type<tc>, window_params = [{transform_indices = @transform_0, window_bounds = array<i64: 128, 24>}, {pipeline_mode = #tpu.pipeline_mode<synchronous>, transform_indices = @transform_1, window_bounds = array<i64: 24, 128>}, {pipeline_mode = #tpu.pipeline_mode<synchronous>, transform_indices = @transform_2, window_bounds = array<i64: 1, 128>}, {transform_indices = @transform_3, window_bounds = array<i64: 128, 128>}]} {
    %c0 = arith.constant 0 : index
    %c0_0 = arith.constant 0 : index
    %0 = vector.load %arg1[%c0, %c0_0] : memref<128x24xf32, #tpu.memory_space<vmem>>, vector<128x24xf32>
    %c0_1 = arith.constant 0 : index
    %c0_2 = arith.constant 0 : index
    %1 = vector.load %arg2[%c0_1, %c0_2] : memref<24x128xf32, #tpu.memory_space<vmem>>, vector<24x128xf32>
    %cst = arith.constant dense<0.000000e+00> : vector<128x128xf32>
    %2 = tpu.matmul %0, %1, %cst {dimension_numbers = #tpu.dot_dimension_numbers<[1], [0], [0], [1], [0, 0, 1, 1], [], []>} : vector<128x24xf32>, vector<24x128xf32>, vector<128x128xf32> -> vector<128x128xf32>
    %c0_3 = arith.constant 0 : index
    %c0_4 = arith.constant 0 : index
    %3 = vector.load %arg3[%c0_3, %c0_4] : memref<1x128xf32, #tpu.memory_space<vmem>>, vector<1x128xf32>
    %4 = vector.broadcast %3 : vector<1x128xf32> to vector<128x128xf32>
    %5 = arith.addf %2, %4 : vector<128x128xf32>
    %c0_5 = arith.constant 0 : index
    %c0_6 = arith.constant 0 : index
    %6 = vector.load %arg4[%c0_5, %c0_6] : memref<128x128xf32, #tpu.memory_space<vmem>>, vector<128x128xf32>
    tpu.vector_store %arg4[%c0_5, %c0_6], %5 {strides = array<i32>} : memref<128x128xf32, #tpu.memory_space<vmem>>, vector<128x128xf32>,
    return
  }
  func.func @transform_0(%arg0: i32) -> (i32, i32) {
    %c0_i32 = arith.constant 0 : i32
    %c0_i32_0 = arith.constant 0 : i32
    return %arg0, %c0_i32 : i32, i32
  }
  func.func @transform_1(%arg0: i32) -> (i32, i32) {
    %c0_i32 = arith.constant 0 : i32
    %c0_i32_0 = arith.constant 0 : i32
    %c0_i32_1 = arith.constant 0 : i32
    return %c0_i32, %c0_i32_0 : i32, i32
  }
  func.func @transform_2(%arg0: i32) -> (i32, i32) {
    %c0_i32 = arith.constant 0 : i32
    %c0_i32_0 = arith.constant 0 : i32
    %c0_i32_1 = arith.constant 0 : i32
    return %c0_i32, %c0_i32_0 : i32, i32
  }
  func.func @transform_3(%arg0: i32) -> (i32, i32) {
    %c0_i32 = arith.constant 0 : i32
    %c0_i32_0 = arith.constant 0 : i32
    return %arg0, %c0_i32 : i32, i32
  }
}

module attributes {stable_mosaic.version = 11 : i64} {
  func.func @_linear_kernel(%arg0: i32, %arg1: memref<128x40xf32, #tpu.memory_space<vmem>>, %arg2: memref<40x128xf32, #tpu.memory_space<vmem>>, %arg3: memref<1x128xf32, #tpu.memory_space<vmem>>, %arg4: memref<128x128xf32, #tpu.memory_space<vmem>>) attributes {dimension_semantics = [#tpu.dimension_semantics<parallel>], iteration_bounds = array<i64: 3>, scalar_prefetch = 0 : i64, scratch_operands = 0 : i64, tpu.core_type = #tpu.core_type<tc>, window_params = [{transform_indices = @transform_0, window_bounds = array<i64: 128, 40>}, {pipeline_mode = #tpu.pipeline_mode<synchronous>, transform_indices = @transform_1, window_bounds = array<i64: 40, 128>}, {pipeline_mode = #tpu.pipeline_mode<synchronous>, transform_indices = @transform_2, window_bounds = array<i64: 1, 128>}, {transform_indices = @transform_3, window_bounds = array<i64: 128, 128>}]} {
    %c0 = arith.constant 0 : index
    %c0_0 = arith.constant 0 : index
    %0 = vector.load %arg1[%c0, %c0_0] : memref<128x40xf32, #tpu.memory_space<vmem>>, vector<128x40xf32>
    %c0_1 = arith.constant 0 : index
    %c0_2 = arith.constant 0 : index
    %1 = vector.load %arg2[%c0_1, %c0_2] : memref<40x128xf32, #tpu.memory_space<vmem>>, vector<40x128xf32>
    %cst = arith.constant dense<0.000000e+00> : vector<128x128xf32>
    %2 = tpu.matmul %0, %1, %cst {dimension_numbers = #tpu.dot_dimension_numbers<[1], [0], [0], [1], [0, 0, 1, 1], [], []>} : vector<128x40xf32>, vector<40x128xf32>, vector<128x128xf32> -> vector<128x128xf32>
    %c0_3 = arith.constant 0 : index
    %c0_4 = arith.constant 0 : index
    %3 = vector.load %arg3[%c0_3, %c0_4] : memref<1x128xf32, #tpu.memory_space<vmem>>, vector<1x128xf32>
    %4 = vector.broadcast %3 : vector<1x128xf32> to vector<128x128xf32>
    %5 = arith.addf %2, %4 : vector<128x128xf32>
    %c0_5 = arith.constant 0 : index
    %c0_6 = arith.constant 0 : index
    %6 = vector.load %arg4[%c0_5, %c0_6] : memref<128x128xf32, #tpu.memory_space<vmem>>, vector<128x128xf32>
    tpu.vector_store %arg4[%c0_5, %c0_6], %5 {strides = array<i32>} : memref<128x128xf32, #tpu.memory_space<vmem>>, vector<128x128xf32>,
    return
  }
  func.func @transform_0(%arg0: i32) -> (i32, i32) {
    %c0_i32 = arith.constant 0 : i32
    %c0_i32_0 = arith.constant 0 : i32
    return %arg0, %c0_i32 : i32, i32
  }
  func.func @transform_1(%arg0: i32) -> (i32, i32) {
    %c0_i32 = arith.constant 0 : i32
    %c0_i32_0 = arith.constant 0 : i32
    %c0_i32_1 = arith.constant 0 : i32
    return %c0_i32, %c0_i32_0 : i32, i32
  }
  func.func @transform_2(%arg0: i32) -> (i32, i32) {
    %c0_i32 = arith.constant 0 : i32
    %c0_i32_0 = arith.constant 0 : i32
    %c0_i32_1 = arith.constant 0 : i32
    return %c0_i32, %c0_i32_0 : i32, i32
  }
  func.func @transform_3(%arg0: i32) -> (i32, i32) {
    %c0_i32 = arith.constant 0 : i32
    %c0_i32_0 = arith.constant 0 : i32
    return %arg0, %c0_i32 : i32, i32
  }
}

module attributes {stable_mosaic.version = 11 : i64} {
  func.func @_dhcf_layer_kernel(%arg0: i32, %arg1: memref<128x384xbf16, #tpu.memory_space<vmem>>, %arg2: memref<128x128xf32, #tpu.memory_space<vmem>>, %arg3: memref<384x128xf32, #tpu.memory_space<vmem>>, %arg4: memref<128x128xf32, #tpu.memory_space<vmem>>, %arg5: memref<1x128xf32, #tpu.memory_space<vmem>>, %arg6: memref<128x128xf32, #tpu.memory_space<vmem>>, %arg7: memref<1x128xf32, #tpu.memory_space<vmem>>, %arg8: memref<128x128xf32, #tpu.memory_space<vmem>>, %arg9: memref<384x128xf32, #tpu.memory_space<vmem>>, %arg10: memref<384x128xbf16, #tpu.memory_space<vmem>>, %arg11: memref<384x128xf32, #tpu.memory_space<vmem>>) attributes {dimension_semantics = [#tpu.dimension_semantics<arbitrary>], iteration_bounds = array<i64: 2>, scalar_prefetch = 0 : i64, scratch_operands = 2 : i64, tpu.core_type = #tpu.core_type<tc>, window_params = [{transform_indices = @transform_0, window_bounds = array<i64: 128, 384>}, {transform_indices = @transform_1, window_bounds = array<i64: 128, 128>}, {pipeline_mode = #tpu.pipeline_mode<synchronous>, transform_indices = @transform_2, window_bounds = array<i64: 384, 128>}, {pipeline_mode = #tpu.pipeline_mode<synchronous>, transform_indices = @transform_3, window_bounds = array<i64: 128, 128>}, {pipeline_mode = #tpu.pipeline_mode<synchronous>, transform_indices = @transform_4, window_bounds = array<i64: 1, 128>}, {pipeline_mode = #tpu.pipeline_mode<synchronous>, transform_indices = @transform_5, window_bounds = array<i64: 128, 128>}, {pipeline_mode = #tpu.pipeline_mode<synchronous>, transform_indices = @transform_6, window_bounds = array<i64: 1, 128>}, {transform_indices = @transform_7, window_bounds = array<i64: 128, 128>}, {pipeline_mode = #tpu.pipeline_mode<synchronous>, transform_indices = @transform_8, window_bounds = array<i64: 384, 128>}]} {
    %c0_i32 = arith.constant 0 : i32
    %0 = arith.cmpi eq, %arg0, %c0_i32 : i32
    %1 = arith.extui %0 : i1 to i32
    %c0_i32_0 = arith.constant 0 : i32
    %2 = arith.cmpi ne, %1, %c0_i32_0 : i32
    scf.if %2 {
      %c0_20 = arith.constant 0 : index
      %c0_21 = arith.constant 0 : index
      %24 = vector.load %arg3[%c0_20, %c0_21] : memref<384x128xf32, #tpu.memory_space<vmem>>, vector<384x128xf32>
      %c0_22 = arith.constant 0 : index
      %c0_23 = arith.constant 0 : index
      %25 = vector.load %arg6[%c0_22, %c0_23] : memref<128x128xf32, #tpu.memory_space<vmem>>, vector<128x128xf32>
      %cst_24 = arith.constant dense<0.000000e+00> : vector<384x128xf32>
      %26 = tpu.matmul %24, %25, %cst_24 {dimension_numbers = #tpu.dot_dimension_numbers<[1], [0], [0], [1], [0, 0, 1, 1], [], []>} : vector<384x128xf32>, vector<128x128xf32>, vector<384x128xf32> -> vector<384x128xf32>
      %c0_25 = arith.constant 0 : index
      %c0_26 = arith.constant 0 : index
      %27 = vector.load %arg7[%c0_25, %c0_26] : memref<1x128xf32, #tpu.memory_space<vmem>>, vector<1x128xf32>
      %28 = vector.broadcast %27 : vector<1x128xf32> to vector<384x128xf32>
      %29 = arith.addf %26, %28 : vector<384x128xf32>
      %30 = arith.truncf %29 : vector<384x128xf32> to vector<384x128xbf16>
      %c0_27 = arith.constant 0 : index
      %c0_28 = arith.constant 0 : index
      %31 = vector.load %arg10[%c0_27, %c0_28] : memref<384x128xbf16, #tpu.memory_space<vmem>>, vector<384x128xbf16>
      tpu.vector_store %arg10[%c0_27, %c0_28], %30 {strides = array<i32>} : memref<384x128xbf16, #tpu.memory_space<vmem>>, vector<384x128xbf16>,
      %cst_29 = arith.constant 0.000000e+00 : f32
      %32 = vector.broadcast %cst_29 : f32 to vector<384x128xf32>
      %c0_30 = arith.constant 0 : index
      %c0_31 = arith.constant 0 : index
      %33 = vector.load %arg11[%c0_30, %c0_31] : memref<384x128xf32, #tpu.memory_space<vmem>>, vector<384x128xf32>
      tpu.vector_store %arg11[%c0_30, %c0_31], %32 {strides = array<i32>} : memref<384x128xf32, #tpu.memory_space<vmem>>, vector<384x128xf32>,
    } else {
    }
    %c0 = arith.constant 0 : index
    %c0_1 = arith.constant 0 : index
    %3 = vector.load %arg2[%c0, %c0_1] : memref<128x128xf32, #tpu.memory_space<vmem>>, vector<128x128xf32>
    %c0_2 = arith.constant 0 : index
    %c0_3 = arith.constant 0 : index
    %4 = vector.load %arg1[%c0_2, %c0_3] : memref<128x384xbf16, #tpu.memory_space<vmem>>, vector<128x384xbf16>
    %c0_4 = arith.constant 0 : index
    %c0_5 = arith.constant 0 : index
    %5 = vector.load %arg4[%c0_4, %c0_5] : memref<128x128xf32, #tpu.memory_space<vmem>>, vector<128x128xf32>
    %cst = arith.constant dense<0.000000e+00> : vector<128x128xf32>
    %6 = tpu.matmul %3, %5, %cst {dimension_numbers = #tpu.dot_dimension_numbers<[1], [0], [0], [1], [0, 0, 1, 1], [], []>} : vector<128x128xf32>, vector<128x128xf32>, vector<128x128xf32> -> vector<128x128xf32>
    %c0_6 = arith.constant 0 : index
    %c0_7 = arith.constant 0 : index
    %7 = vector.load %arg5[%c0_6, %c0_7] : memref<1x128xf32, #tpu.memory_space<vmem>>, vector<1x128xf32>
    %8 = vector.broadcast %7 : vector<1x128xf32> to vector<128x128xf32>
    %9 = arith.addf %6, %8 : vector<128x128xf32>
    %c0_8 = arith.constant 0 : index
    %c0_9 = arith.constant 0 : index
    %10 = vector.load %arg10[%c0_8, %c0_9] : memref<384x128xbf16, #tpu.memory_space<vmem>>, vector<384x128xbf16>
    %cst_10 = arith.constant dense<0.000000e+00> : vector<128x128xf32>
    %11 = tpu.matmul %4, %10, %cst_10 {dimension_numbers = #tpu.dot_dimension_numbers<[1], [0], [0], [1], [0, 0, 1, 1], [], []>} : vector<128x384xbf16>, vector<384x128xbf16>, vector<128x128xf32> -> vector<128x128xf32>
    %12 = arith.addf %11, %3 : vector<128x128xf32>
    %cst_11 = arith.constant 0.000000e+00 : f32
    %13 = vector.broadcast %cst_11 : f32 to vector<128x128xf32>
    %14 = arith.maximumf %12, %13 : vector<128x128xf32>
    %c0_12 = arith.constant 0 : index
    %c0_13 = arith.constant 0 : index
    %15 = vector.load %arg8[%c0_12, %c0_13] : memref<128x128xf32, #tpu.memory_space<vmem>>, vector<128x128xf32>
    tpu.vector_store %arg8[%c0_12, %c0_13], %14 {strides = array<i32>} : memref<128x128xf32, #tpu.memory_space<vmem>>, vector<128x128xf32>,
    %c0_14 = arith.constant 0 : index
    %c0_15 = arith.constant 0 : index
    %16 = vector.load %arg11[%c0_14, %c0_15] : memref<384x128xf32, #tpu.memory_space<vmem>>, vector<384x128xf32>
    %17 = arith.truncf %9 : vector<128x128xf32> to vector<128x128xbf16>
    %cst_16 = arith.constant dense<0.000000e+00> : vector<384x128xf32>
    %18 = tpu.matmul %4, %17, %cst_16 {dimension_numbers = #tpu.dot_dimension_numbers<[0], [0], [1], [1], [0, 1, 1, 1], [], []>} : vector<128x384xbf16>, vector<128x128xbf16>, vector<384x128xf32> -> vector<384x128xf32>
    %19 = arith.addf %16, %18 : vector<384x128xf32>
    %c0_17 = arith.constant 0 : index
    %c0_18 = arith.constant 0 : index
    %20 = vector.load %arg11[%c0_17, %c0_18] : memref<384x128xf32, #tpu.memory_space<vmem>>, vector<384x128xf32>
    tpu.vector_store %arg11[%c0_17, %c0_18], %19 {strides = array<i32>} : memref<384x128xf32, #tpu.memory_space<vmem>>, vector<384x128xf32>,
    %c1_i32 = arith.constant 1 : i32
    %21 = arith.cmpi eq, %arg0, %c1_i32 : i32
    %22 = arith.extui %21 : i1 to i32
    %c0_i32_19 = arith.constant 0 : i32
    %23 = arith.cmpi ne, %22, %c0_i32_19 : i32
    scf.if %23 {
      %c0_20 = arith.constant 0 : index
      %c0_21 = arith.constant 0 : index
      %24 = vector.load %arg11[%c0_20, %c0_21] : memref<384x128xf32, #tpu.memory_space<vmem>>, vector<384x128xf32>
      %c0_22 = arith.constant 0 : index
      %c0_23 = arith.constant 0 : index
      %25 = vector.load %arg3[%c0_22, %c0_23] : memref<384x128xf32, #tpu.memory_space<vmem>>, vector<384x128xf32>
      %26 = arith.addf %24, %25 : vector<384x128xf32>
      %cst_24 = arith.constant 0.000000e+00 : f32
      %27 = vector.broadcast %cst_24 : f32 to vector<384x128xf32>
      %28 = arith.maximumf %26, %27 : vector<384x128xf32>
      %c0_25 = arith.constant 0 : index
      %c0_26 = arith.constant 0 : index
      %29 = vector.load %arg9[%c0_25, %c0_26] : memref<384x128xf32, #tpu.memory_space<vmem>>, vector<384x128xf32>
      tpu.vector_store %arg9[%c0_25, %c0_26], %28 {strides = array<i32>} : memref<384x128xf32, #tpu.memory_space<vmem>>, vector<384x128xf32>,
    } else {
    }
    return
  }
  func.func @transform_0(%arg0: i32) -> (i32, i32) {
    %c0_i32 = arith.constant 0 : i32
    %c0_i32_0 = arith.constant 0 : i32
    return %arg0, %c0_i32 : i32, i32
  }
  func.func @transform_1(%arg0: i32) -> (i32, i32) {
    %c0_i32 = arith.constant 0 : i32
    %c0_i32_0 = arith.constant 0 : i32
    return %arg0, %c0_i32 : i32, i32
  }
  func.func @transform_2(%arg0: i32) -> (i32, i32) {
    %c0_i32 = arith.constant 0 : i32
    %c0_i32_0 = arith.constant 0 : i32
    %c0_i32_1 = arith.constant 0 : i32
    return %c0_i32, %c0_i32_0 : i32, i32
  }
  func.func @transform_3(%arg0: i32) -> (i32, i32) {
    %c0_i32 = arith.constant 0 : i32
    %c0_i32_0 = arith.constant 0 : i32
    %c0_i32_1 = arith.constant 0 : i32
    return %c0_i32, %c0_i32_0 : i32, i32
  }
  func.func @transform_4(%arg0: i32) -> (i32, i32) {
    %c0_i32 = arith.constant 0 : i32
    %c0_i32_0 = arith.constant 0 : i32
    %c0_i32_1 = arith.constant 0 : i32
    return %c0_i32, %c0_i32_0 : i32, i32
  }
  func.func @transform_5(%arg0: i32) -> (i32, i32) {
    %c0_i32 = arith.constant 0 : i32
    %c0_i32_0 = arith.constant 0 : i32
    %c0_i32_1 = arith.constant 0 : i32
    return %c0_i32, %c0_i32_0 : i32, i32
  }
  func.func @transform_6(%arg0: i32) -> (i32, i32) {
    %c0_i32 = arith.constant 0 : i32
    %c0_i32_0 = arith.constant 0 : i32
    %c0_i32_1 = arith.constant 0 : i32
    return %c0_i32, %c0_i32_0 : i32, i32
  }
  func.func @transform_7(%arg0: i32) -> (i32, i32) {
    %c0_i32 = arith.constant 0 : i32
    %c0_i32_0 = arith.constant 0 : i32
    return %arg0, %c0_i32 : i32, i32
  }
  func.func @transform_8(%arg0: i32) -> (i32, i32) {
    %c0_i32 = arith.constant 0 : i32
    %c0_i32_0 = arith.constant 0 : i32
    %c0_i32_1 = arith.constant 0 : i32
    return %c0_i32, %c0_i32_0 : i32, i32
  }
}

</mosaic_0001>

<bundles_post_ra>
// kernel: dhcf_forward.4
= control target key start
LH: loop header
LB: loop body
LE: loop exit
PB: predicated region body
PF: predicated region fallthrough
CT: control target
= control target key end

     0   :  { %8 = vsyncpa [#allocation3], 0  ;;  %s888_s0 = inlined_call_operand.vmem [shape: f32[256,24], index: 0, kind: input, shape index: {}]   ;;  %s889_s1 = inlined_call_operand.hbm [shape: f32[24,128], index: 1, kind: input, shape index: {}]   ;;  %s890_s2 = inlined_call_operand.hbm [shape: f32[1,128], index: 2, kind: input, shape index: {}]   ;;  %s891_s3 = inlined_call_operand.vmem [shape: f32[256,128], index: 3, kind: output, shape index: {}]  }
   0x1   :  { %9 = vsyncpa [#allocation5], 0  ;;  %s732_s12 = smov 0  }
   0x2 LB: > { %s516_s13 = sadd.s32 4294967295, %s706_s12   ;;  %p518_p0 = scmp.ge.s32.totalorder %s706_s12, 1  ;;  %s706_s12 = sphi %s732_s12, %s15_s12  }
   0x3   : > { %p114_p1 = scmp.lt.s32.totalorder %s706_s12, 3  ;;  %s708_s14 = smov [#allocation2]  }
   0x4   : > { %s126_s15 = sshll.u32 %s708_s14, 4  ;;  %p746_p3 = scmp.eq.s32.totalorder %s516_s13, 0  ;;  %s127_s15 = int_to_ptr.vmem [resolvable:$true] %s126_s15 }
   0x5   : > { %p740_p2 = pnand %p518_p0, %p114_p1  ;;  %s709_s18 = smov [#allocation4]  }
   0x6   : > { %s896_s17 = scalar_select %p746_p3, 1, 0 }
   0x7   : > { %s895_s16 = scalar_select %p740_p2, 1, 0 }
   0x8   : > { %p613_p4 = pneg %p740_p2  ;;  %s140_s19 = sshll.u32 %s709_s18, 4  ;;  %s758_s19 = int_to_ptr.vmem [resolvable:$true] %s140_s19 }
   0x9   : > { %s636_s23 = scalar_lea.hbm %s889_s1, 384 }
   0xa   : > { %p754_p5 = pnand %p746_p3, %p613_p4  ;;  %p637_p6 = scmp.ne.s32.totalorder %s889_s1, %s636_s23 }
   0xb   : > { %p643_p10 = scmp.lt.u32.totalorder %s636_s23, %s889_s1 }
   0xc   : > { %p638_p7 = pneg %p754_p5 }
   0xe   : > { %p639_p8 = pnand %p638_p7, %p637_p6 }
  0x10   : > { %p640_p9 = pneg %p639_p8 }
  0x12   : > { %p645_p11 = pnand %p643_p10, %p640_p9 }
  0x14   : > { %648 = shalt.err (!%p645_p11)
}
  0x15   : > { %s649_s28 = scalar_lea.vmem %s127_s15, 384  ;;  %p657_p1 = scmp.lt.s32.totalorder %s127_s15, %s127_s15 }
  0x16   : > { %p650_p12 = scmp.ne.s32.totalorder %s127_s15, %s649_s28  ;;  %p658_p4 = scmp.lt.s32.totalorder %s649_s28, %s649_s28 }
  0x18   : > { %p652_p13 = pnand %p650_p12, %p638_p7  ;;  %p659_p3 = por %p658_p4, %p657_p1 }
  0x1a   : > { %p653_p0 = pneg %p652_p13 }
  0x1c   : > { %p660_p2 = pnand %p659_p3, %p653_p0 }
  0x1e   : > { %663 = shalt.err (!%p660_p2)
}
  0x1f   : > { %s710_s29 = smov 128   ;;  %s711_s30 = smov 8  }
  0x20   : > { %616 = dma.hbm_to_vmem [thread:$0]  (!%p754_p5), %s889_s1, 384, %s127_s15, [#allocation3], %s710_s29, %s710_s29, %s711_s30  }
  0x21   : > { %s664_s8 = scalar_lea.hbm %s890_s2, 16 }
  0x22   : > { %p665_p6 = scmp.ne.s32.totalorder %s890_s2, %s664_s8  ;;  %p671_p8 = scmp.lt.u32.totalorder %s664_s8, %s890_s2 }
  0x24   : > { %p667_p2 = pnand %p665_p6, %p638_p7 }
  0x26   : > { %p668_p3 = pneg %p667_p2 }
  0x28   : > { %p673_p9 = pnand %p671_p8, %p668_p3 }
  0x2a   : > { %676 = shalt.err (!%p673_p9)
}
  0x2b   : > { %s677_s15 = scalar_lea.vmem %s758_s19, 16  ;;  %s684_s18 = scalar_lea.vmem %s758_s19, 32 }
  0x2c   : > { %p678_p10 = scmp.ne.s32.totalorder %s758_s19, %s677_s15  ;;  %p685_p13 = scmp.lt.s32.totalorder %s758_s19, %s758_s19 }
  0x2d   : > { %p686_p0 = scmp.lt.s32.totalorder %s684_s18, %s677_s15 }
  0x2e   : > { %p680_p11 = pnand %p678_p10, %p638_p7 }
  0x2f   : > { %p687_p1 = por %p686_p0, %p685_p13 }
  0x30   : > { %p681_p12 = pneg %p680_p11 }
  0x32   : > { %p688_p4 = pnand %p687_p1, %p681_p12 }
  0x34   : > { %691 = shalt.err (!%p688_p4)
}
  0x35   : > { %619 = dma.hbm_to_vmem [thread:$0]  (!%p754_p5), %s890_s2, 16, %s758_s19, [#allocation5]  }
  0x36   : > { %p898_p6 = scmp.ne.s32.totalorder %s895_s16, 0 }
  0x37   : > { %p899_p7 = scmp.ne.s32.totalorder (!%p898_p6), %s896_s17, 0 }
  0x38   : > { %162 = sbr.rel (%p898_p6) target bundleno = 304 (0x130), region = 32 }
  0x3f   : > { %697 = dma.done.wait (%p899_p7), [#allocation3], 384  }
  0x40   : > { %699 = vsyncadd (%p899_p7), [#allocation3], 4294966912 }
  0x41   : > { %701 = dma.done.wait (%p899_p7), [#allocation5], 16  }
  0x42   : > { %703 = vsyncadd (%p899_p7), [#allocation5], 4294967280  ;;  %s525_s20 = sshll.u32 %s516_s13, 4  ;;  %vm228_vm0 = vcmask 195584   ;;  %v218_v0 = vld [vmem:[#allocation2] sm:$0xff]  ;;  %v219_v1 = vld [vmem:[#allocation2 + $0x8] sm:$0xff] }
  0x43   : > { %p191_p2 = scmp.lt.s32.totalorder %s525_s20, 31  ;;  %v597_v2 = vpack.c.bf16 %v219_v1, %v218_v0  ;;  %v220_v5 = vld [vmem:[#allocation2 + $0x10] sm:$0xff]  ;;  %v529_v20 = vld [vmem:[#allocation4] ss:$0 sm:$0xff] }
  0x45   : > { %s901_s20 = smov (!%p191_p2, %s525_s20), 31  ;;  %598 = vmatprep.subr.bf16.mxu0 %v597_v2  ;;  %601 = vmatprep.subr.bf16.mxu1 %v597_v2 }
  0x46   : > { %s526_s16 = sshll.u32 %s901_s20, 3  ;;  %600 = vmatpush3.bf16.msra.mxu0 %v597_v2  ;;  %603 = vmatpush3.bf16.msra.mxu1 %v597_v2 }
  0x47   : > { %s828_s24 = scalar_lea.vmem %s888_s0, %s526_s16  ;;  %571 = vmatprep.subr.mxu0 %v220_v5  ;;  %602 = vmatprep.subr.mxu1 %v220_v5  ;;  %s867_s25 = scalar_lea.vmem %s891_s3, %s526_s16 }
  0x48   : > { %v202_v3 = vld [vmem:[%s828_s24] sm:$0xff]  ;;  %v203_v6 = vld [vmem:[%s828_s24 + $0x8] sm:$0xff]  ;;  %v204_v8 = vld [vmem:[%s828_s24 + $0x10] sm:$0xff] }
  0x49   : > { %v210_v4 = vld [vmem:[%s828_s24 + $0x40] sm:$0xff]  ;;  %573 = vmatprep.mubr.msk.f32.mxu0 %vm228_vm0, %v202_v3  ;;  %v211_v7 = vld [vmem:[%s828_s24 + $0x48] sm:$0xff]  ;;  %v212_v9 = vld [vmem:[%s828_s24 + $0x50] sm:$0xff] }
  0x4a   : > { %585 = vmatprep.mubr.msk.f32.mxu1 %vm228_vm0, %v210_v4  ;;  %572 = vmatpush3.msra.mxu0 %v220_v5  ;;  %v205_v10 = vld [vmem:[%s828_s24 + $0x18] sm:$0xff]  ;;  %v206_v12 = vld [vmem:[%s828_s24 + $0x20] sm:$0xff]  ;;  %v207_v14 = vld [vmem:[%s828_s24 + $0x28] sm:$0xff] }
  0x4b   : > { %604 = vmatpush3.msra.mxu1 %v220_v5  ;;  %574 = vmatmul.mubr.msk.f32.vlgmr.msra.gmra.mrb[0].mxu0 %vm228_vm0, %v203_v6  ;;  %v213_v11 = vld [vmem:[%s828_s24 + $0x58] sm:$0xff]  ;;  %v214_v13 = vld [vmem:[%s828_s24 + $0x60] sm:$0xff]  ;;  %v215_v15 = vld [vmem:[%s828_s24 + $0x68] sm:$0xff] }
  0x4c   : > { %586 = vmatmul.mubr.msk.f32.vlgmr.msra.gmra.mrb[0].mxu1 %vm228_vm0, %v211_v7  ;;  %576 = vmatprep.mubr.msk.f32.mxu0 %vm228_vm0, %v204_v8  ;;  %v208_v16 = vld [vmem:[%s828_s24 + $0x30] sm:$0xff]  ;;  %v209_v18 = vld [vmem:[%s828_s24 + $0x38] sm:$0xff] }
  0x4d   : > { %588 = vmatprep.mubr.msk.f32.mxu1 %vm228_vm0, %v212_v9  ;;  %v216_v17 = vld [vmem:[%s828_s24 + $0x70] sm:$0xff]  ;;  %v217_v19 = vld [vmem:[%s828_s24 + $0x78] sm:$0xff] }
  0x4f   : > { %577 = vmatmul.mubr.msk.f32.gmra.mrb[2].mxu0 %vm228_vm0, %v205_v10 }
  0x50   : > { %589 = vmatmul.mubr.msk.f32.gmra.mrb[2].mxu1 %vm228_vm0, %v213_v11  ;;  %579 = vmatprep.mubr.msk.f32.mxu0 %vm228_vm0, %v206_v12 }
  0x51   : > { %591 = vmatprep.mubr.msk.f32.mxu1 %vm228_vm0, %v214_v13 }
  0x53   : > { %580 = vmatmul.mubr.msk.f32.gmra.mrb[4].mxu0 %vm228_vm0, %v207_v14 }
  0x54   : > { %592 = vmatmul.mubr.msk.f32.gmra.mrb[4].mxu1 %vm228_vm0, %v215_v15  ;;  %582 = vmatprep.mubr.msk.f32.mxu0 %vm228_vm0, %v208_v16 }
  0x55   : > { %594 = vmatprep.mubr.msk.f32.mxu1 %vm228_vm0, %v216_v17 }
  0x57   : > { %583 = vmatmul.mubr.msk.f32.gmra.mrb[6].mxu0 %vm228_vm0, %v209_v18 }
  0x58   : > { %595 = vmatmul.mubr.msk.f32.gmra.mrb[6].mxu1 %vm228_vm0, %v217_v19 }
 0x11e   : > { %v575_v21 = vpop.f32.mrb[0].mxu0 }
 0x11f   : > { %v587_v22 = vpop.f32.mrb[0].mxu1  ;;  %v349_v23 = vadd.f32 %v575_v21, %v529_v20  ;;  %v343_v25 = vpop.f32.mrb[1].mxu0 }
 0x120   : > { %v389_v24 = vadd.f32 %v587_v22, %v529_v20  ;;  %v383_v26 = vpop.f32.mrb[1].mxu1  ;;  %v344_v27 = vadd.f32 %v529_v20, %v343_v25 }
 0x121   : > { %v384_v28 = vadd.f32 %v529_v20, %v383_v26  ;;  %423 = vst [vmem:[%s867_s25 + $0x8] sm:$0xff] %v349_v23 }
 0x122   : > { %431 = vst [vmem:[%s867_s25 + $0x48] sm:$0xff] %v389_v24  ;;  %422 = vst [vmem:[%s867_s25] sm:$0xff] %v344_v27  ;;  %v578_v29 = vpop.f32.mrb[2].mxu0 }
 0x123   : > { %430 = vst [vmem:[%s867_s25 + $0x40] sm:$0xff] %v384_v28  ;;  %v590_v30 = vpop.f32.mrb[2].mxu1  ;;  %v359_v31 = vadd.f32 %v578_v29, %v529_v20  ;;  %v353_v33 = vpop.f32.mrb[3].mxu0 }
 0x124   : > { %v399_v32 = vadd.f32 %v590_v30, %v529_v20  ;;  %v393_v34 = vpop.f32.mrb[3].mxu1  ;;  %v354_v35 = vadd.f32 %v529_v20, %v353_v33 }
 0x125   : > { %v394_v36 = vadd.f32 %v529_v20, %v393_v34  ;;  %425 = vst [vmem:[%s867_s25 + $0x18] sm:$0xff] %v359_v31 }
 0x126   : > { %433 = vst [vmem:[%s867_s25 + $0x58] sm:$0xff] %v399_v32  ;;  %424 = vst [vmem:[%s867_s25 + $0x10] sm:$0xff] %v354_v35  ;;  %v581_v37 = vpop.f32.mrb[4].mxu0 }
 0x127   : > { %432 = vst [vmem:[%s867_s25 + $0x50] sm:$0xff] %v394_v36  ;;  %v593_v38 = vpop.f32.mrb[4].mxu1  ;;  %v369_v39 = vadd.f32 %v581_v37, %v529_v20  ;;  %v363_v41 = vpop.f32.mrb[5].mxu0 }
 0x128   : > { %v409_v40 = vadd.f32 %v593_v38, %v529_v20  ;;  %v403_v42 = vpop.f32.mrb[5].mxu1  ;;  %v364_v43 = vadd.f32 %v529_v20, %v363_v41 }
 0x129   : > { %v404_v44 = vadd.f32 %v529_v20, %v403_v42  ;;  %427 = vst [vmem:[%s867_s25 + $0x28] sm:$0xff] %v369_v39 }
 0x12a   : > { %435 = vst [vmem:[%s867_s25 + $0x68] sm:$0xff] %v409_v40  ;;  %426 = vst [vmem:[%s867_s25 + $0x20] sm:$0xff] %v364_v43  ;;  %v584_v45 = vpop.f32.mrb[6].mxu0 }
 0x12b   : > { %434 = vst [vmem:[%s867_s25 + $0x60] sm:$0xff] %v404_v44  ;;  %v596_v46 = vpop.f32.mrb[6].mxu1  ;;  %v379_v47 = vadd.f32 %v584_v45, %v529_v20  ;;  %v373_v49 = vpop.f32.mrb[7].mxu0 }
 0x12c   : > { %v419_v48 = vadd.f32 %v596_v46, %v529_v20  ;;  %v413_v50 = vpop.f32.mrb[7].mxu1  ;;  %v374_v51 = vadd.f32 %v529_v20, %v373_v49 }
 0x12d   : > { %v414_v52 = vadd.f32 %v529_v20, %v413_v50  ;;  %429 = vst [vmem:[%s867_s25 + $0x38] sm:$0xff] %v379_v47 }
 0x12e   : > { %437 = vst [vmem:[%s867_s25 + $0x78] sm:$0xff] %v419_v48  ;;  %428 = vst [vmem:[%s867_s25 + $0x30] sm:$0xff] %v374_v51 }
 0x12f   : > { %436 = vst [vmem:[%s867_s25 + $0x70] sm:$0xff] %v414_v52 }
 0x130 PF: > { %s15_s12 = sadd.s32 1, %s706_s12  }
 0x131   : > { %p12_p5 = scmp.ge.s32.totalorder %s15_s12, 4  }
 0x133   :  { %14 = sbr.rel (!%p12_p5) target bundleno = 2 (0x2), region = 71 }
 0x13a   :  { %460 = vsyncpa [#allocation3], 1 }
 0x13b   :  { %462 = vsyncpa [#allocation3 + $0x1], 1 }
 0x13c   :  { %463 = vsyncpa [#allocation5], 1 }

// kernel: dhcf_forward.5
= control target key start
LH: loop header
LB: loop body
LE: loop exit
PB: predicated region body
PF: predicated region fallthrough
CT: control target
= control target key end

     0   :  { %s601_s12 = smov 0   ;;  %s695_s0 = inlined_call_operand.vmem [shape: f32[384,40], index: 0, kind: input, shape index: {}]   ;;  %s696_s1 = inlined_call_operand.vmem [shape: f32[40,128], index: 1, kind: input, shape index: {}]   ;;  %s697_s2 = inlined_call_operand.vmem [shape: f32[1,128], index: 2, kind: input, shape index: {}]   ;;  %s698_s3 = inlined_call_operand.vmem [shape: f32[384,128], index: 3, kind: output, shape index: {}]  }
   0x1 LB: > { %s468_s13 = sadd.s32 4294967295, %s579_s12   ;;  %p472_p0 = scmp.ge.s32.totalorder %s579_s12, 1  ;;  %s579_s12 = sphi %s601_s12, %s13_s12  }
   0x2   : > { %p138_p1 = scmp.lt.s32.totalorder %s579_s12, 4 }
   0x4   : > { %p139_p2 = pnand %p472_p0, %p138_p1 }
   0x5   : > { %v190_v0 = vld [vmem:[%s696_s1] sm:$0xff] (!%p139_p2)  ;;  %v191_v1 = vld [vmem:[%s696_s1 + $0x8] sm:$0xff] (!%p139_p2)  ;;  %v192_v2 = vld [vmem:[%s696_s1 + $0x10] sm:$0xff] (!%p139_p2)  ;;  %s473_s20 = sshll.u32 (!%p139_p2), %s468_s13, 4  ;;  %vm202_vm0 = vcmask (!%p139_p2), 326656  }
   0x6   : > { %142 = sbr.rel (%p139_p2) target bundleno = 247 (0xf7), region = 32  ;;  %v551_v3 = vpack.c.bf16 (!%p139_p2), %v191_v1, %v190_v0  ;;  %v193_v4 = vld [vmem:[%s696_s1 + $0x18] sm:$0xff] (!%p139_p2)  ;;  %p163_p3 = scmp.lt.s32.totalorder (!%p139_p2), %s473_s20, 47  ;;  %v194_v6 = vld [vmem:[%s696_s1 + $0x20] sm:$0xff] (!%p139_p2) }
   0x7   : > { %v555_v5 = vpack.c.bf16 (!%p139_p2), %v193_v4, %v192_v2  ;;  %v477_v23 = vld [vmem:[%s697_s2] ss:$0 sm:$0xff] (!%p139_p2) }
   0x8   : > { %552 = vmatprep.subr.bf16.mxu0 (!%p139_p2), %v551_v3  ;;  %559 = vmatprep.subr.bf16.mxu1 (!%p139_p2), %v551_v3 }
   0x9   : > { %554 = vmatpush3.bf16.msra.mxu0 (!%p139_p2), %v551_v3  ;;  %562 = vmatpush3.bf16.msra.mxu1 (!%p139_p2), %v551_v3 }
   0xa   : > { %556 = vmatprep.subr.bf16.mxu0 (!%p139_p2), %v555_v5  ;;  %560 = vmatprep.subr.bf16.mxu1 (!%p139_p2), %v555_v5 }
   0xd   : > { %s700_s20 = smov (!%p163_p3, %s473_s20), 47  ;;  %558 = vmatpush3.bf16.msra.mxu0 %v555_v5  ;;  %563 = vmatpush3.bf16.msra.mxu1 %v555_v5 }
   0xe   : > { %s474_s23 = sshll.u32 %s700_s20, 3  ;;  %525 = vmatprep.subr.mxu0 %v194_v6  ;;  %561 = vmatprep.subr.mxu1 %v194_v6 }
   0xf   : > { %s632_s28 = scalar_lea.vmem %s695_s0, %s474_s23  ;;  %s674_s6 = scalar_lea.vmem %s698_s3, %s474_s23 }
  0x10   : > { %v174_v7 = vld [vmem:[%s632_s28] sm:$0xff]  ;;  %v175_v9 = vld [vmem:[%s632_s28 + $0x8] sm:$0xff]  ;;  %v176_v11 = vld [vmem:[%s632_s28 + $0x10] sm:$0xff] }
  0x11   : > { %v182_v8 = vld [vmem:[%s632_s28 + $0x40] sm:$0xff]  ;;  %527 = vmatprep.mubr.msk.f32.mxu0 %vm202_vm0, %v174_v7  ;;  %v183_v10 = vld [vmem:[%s632_s28 + $0x48] sm:$0xff]  ;;  %v184_v12 = vld [vmem:[%s632_s28 + $0x50] sm:$0xff]  ;;  %526 = vmatpush3.msra.mxu0 %v194_v6 }
  0x12   : > { %539 = vmatprep.mubr.msk.f32.mxu1 %vm202_vm0, %v182_v8  ;;  %564 = vmatpush3.msra.mxu1 %v194_v6  ;;  %v177_v13 = vld [vmem:[%s632_s28 + $0x18] sm:$0xff]  ;;  %v178_v15 = vld [vmem:[%s632_s28 + $0x20] sm:$0xff]  ;;  %v179_v17 = vld [vmem:[%s632_s28 + $0x28] sm:$0xff] }
  0x13   : > { %528 = vmatmul.mubr.msk.f32.vlgmr.msra.gmra.mrb[0].mxu0 %vm202_vm0, %v175_v9  ;;  %540 = vmatmul.mubr.msk.f32.vlgmr.msra.gmra.mrb[0].mxu1 %vm202_vm0, %v183_v10  ;;  %v185_v14 = vld [vmem:[%s632_s28 + $0x58] sm:$0xff]  ;;  %v186_v16 = vld [vmem:[%s632_s28 + $0x60] sm:$0xff]  ;;  %v187_v18 = vld [vmem:[%s632_s28 + $0x68] sm:$0xff] }
  0x14   : > { %530 = vmatprep.mubr.msk.f32.mxu0 %vm202_vm0, %v176_v11  ;;  %542 = vmatprep.mubr.msk.f32.mxu1 %vm202_vm0, %v184_v12  ;;  %v180_v19 = vld [vmem:[%s632_s28 + $0x30] sm:$0xff]  ;;  %v181_v21 = vld [vmem:[%s632_s28 + $0x38] sm:$0xff] }
  0x15   : > { %v188_v20 = vld [vmem:[%s632_s28 + $0x70] sm:$0xff]  ;;  %v189_v22 = vld [vmem:[%s632_s28 + $0x78] sm:$0xff] }
  0x17   : > { %531 = vmatmul.mubr.msk.f32.gmra.mrb[2].mxu0 %vm202_vm0, %v177_v13  ;;  %543 = vmatmul.mubr.msk.f32.gmra.mrb[2].mxu1 %vm202_vm0, %v185_v14 }
  0x18   : > { %533 = vmatprep.mubr.msk.f32.mxu0 %vm202_vm0, %v178_v15  ;;  %545 = vmatprep.mubr.msk.f32.mxu1 %vm202_vm0, %v186_v16 }
  0x1b   : > { %534 = vmatmul.mubr.msk.f32.gmra.mrb[4].mxu0 %vm202_vm0, %v179_v17  ;;  %546 = vmatmul.mubr.msk.f32.gmra.mrb[4].mxu1 %vm202_vm0, %v187_v18 }
  0x1c   : > { %536 = vmatprep.mubr.msk.f32.mxu0 %vm202_vm0, %v180_v19  ;;  %548 = vmatprep.mubr.msk.f32.mxu1 %vm202_vm0, %v188_v20 }
  0x1f   : > { %537 = vmatmul.mubr.msk.f32.gmra.mrb[6].mxu0 %vm202_vm0, %v181_v21  ;;  %549 = vmatmul.mubr.msk.f32.gmra.mrb[6].mxu1 %vm202_vm0, %v189_v22 }
  0xe6   : > { %v529_v24 = vpop.f32.mrb[0].mxu0  ;;  %v541_v25 = vpop.f32.mrb[0].mxu1 }
  0xe7   : > { %v323_v26 = vadd.f32 %v529_v24, %v477_v23  ;;  %v363_v27 = vadd.f32 %v541_v25, %v477_v23  ;;  %v317_v28 = vpop.f32.mrb[1].mxu0  ;;  %v357_v29 = vpop.f32.mrb[1].mxu1 }
  0xe8   : > { %v318_v30 = vadd.f32 %v477_v23, %v317_v28  ;;  %v358_v31 = vadd.f32 %v477_v23, %v357_v29 }
  0xe9   : > { %397 = vst [vmem:[%s674_s6 + $0x8] sm:$0xff] %v323_v26  ;;  %405 = vst [vmem:[%s674_s6 + $0x48] sm:$0xff] %v363_v27 }
  0xea   : > { %396 = vst [vmem:[%s674_s6] sm:$0xff] %v318_v30  ;;  %404 = vst [vmem:[%s674_s6 + $0x40] sm:$0xff] %v358_v31  ;;  %v532_v32 = vpop.f32.mrb[2].mxu0  ;;  %v544_v33 = vpop.f32.mrb[2].mxu1 }
  0xeb   : > { %v333_v34 = vadd.f32 %v532_v32, %v477_v23  ;;  %v373_v35 = vadd.f32 %v544_v33, %v477_v23  ;;  %v327_v36 = vpop.f32.mrb[3].mxu0  ;;  %v367_v37 = vpop.f32.mrb[3].mxu1 }
  0xec   : > { %v328_v38 = vadd.f32 %v477_v23, %v327_v36  ;;  %v368_v39 = vadd.f32 %v477_v23, %v367_v37 }
  0xed   : > { %399 = vst [vmem:[%s674_s6 + $0x18] sm:$0xff] %v333_v34  ;;  %407 = vst [vmem:[%s674_s6 + $0x58] sm:$0xff] %v373_v35 }
  0xee   : > { %398 = vst [vmem:[%s674_s6 + $0x10] sm:$0xff] %v328_v38  ;;  %406 = vst [vmem:[%s674_s6 + $0x50] sm:$0xff] %v368_v39  ;;  %v535_v40 = vpop.f32.mrb[4].mxu0  ;;  %v547_v41 = vpop.f32.mrb[4].mxu1 }
  0xef   : > { %v343_v42 = vadd.f32 %v535_v40, %v477_v23  ;;  %v383_v43 = vadd.f32 %v547_v41, %v477_v23  ;;  %v337_v44 = vpop.f32.mrb[5].mxu0  ;;  %v377_v45 = vpop.f32.mrb[5].mxu1 }
  0xf0   : > { %v338_v46 = vadd.f32 %v477_v23, %v337_v44  ;;  %v378_v47 = vadd.f32 %v477_v23, %v377_v45 }
  0xf1   : > { %401 = vst [vmem:[%s674_s6 + $0x28] sm:$0xff] %v343_v42  ;;  %409 = vst [vmem:[%s674_s6 + $0x68] sm:$0xff] %v383_v43 }
  0xf2   : > { %400 = vst [vmem:[%s674_s6 + $0x20] sm:$0xff] %v338_v46  ;;  %408 = vst [vmem:[%s674_s6 + $0x60] sm:$0xff] %v378_v47  ;;  %v538_v48 = vpop.f32.mrb[6].mxu0  ;;  %v550_v49 = vpop.f32.mrb[6].mxu1 }
  0xf3   : > { %v353_v50 = vadd.f32 %v538_v48, %v477_v23  ;;  %v393_v51 = vadd.f32 %v550_v49, %v477_v23  ;;  %v347_v52 = vpop.f32.mrb[7].mxu0  ;;  %v387_v53 = vpop.f32.mrb[7].mxu1 }
  0xf4   : > { %v348_v54 = vadd.f32 %v477_v23, %v347_v52  ;;  %v388_v55 = vadd.f32 %v477_v23, %v387_v53 }
  0xf5   : > { %403 = vst [vmem:[%s674_s6 + $0x38] sm:$0xff] %v353_v50  ;;  %411 = vst [vmem:[%s674_s6 + $0x78] sm:$0xff] %v393_v51 }
  0xf6   : > { %402 = vst [vmem:[%s674_s6 + $0x30] sm:$0xff] %v348_v54  ;;  %410 = vst [vmem:[%s674_s6 + $0x70] sm:$0xff] %v388_v55 }
  0xf7 PF: > { %s13_s12 = sadd.s32 1, %s579_s12  }
  0xf8   : > { %p10_p4 = scmp.ge.s32.totalorder %s13_s12, 5  }
  0xfa   :  { %12 = sbr.rel (!%p10_p4) target bundleno = 1 (0x1), region = 62 }

// kernel: dhcf_forward.6
= control target key start
LH: loop header
LB: loop body
LE: loop exit
PB: predicated region body
PF: predicated region fallthrough
CT: control target
= control target key end

     0   :  { %s2843_s27 = smov 0   ;;  %s3695_s0 = inlined_call_operand.vmem [shape: bf16[256,384], index: 0, kind: input, shape index: {}]   ;;  %s3696_s1 = inlined_call_operand.vmem [shape: f32[256,128], index: 1, kind: input, shape index: {}]   ;;  %s3697_s2 = inlined_call_operand.vmem [shape: f32[384,128], index: 2, kind: input, shape index: {}]   ;;  %s3698_s3 = inlined_call_operand.vmem [shape: f32[128,128], index: 3, kind: input, shape index: {}]   ;;  %s3699_s4 = inlined_call_operand.vmem [shape: f32[1,128], index: 4, kind: input, shape index: {}]   ;;  %s3700_s5 = inlined_call_operand.vmem [shape: f32[128,128], index: 5, kind: input, shape index: {}]   ;;  %s3701_s6 = inlined_call_operand.vmem [shape: f32[1,128], index: 6, kind: input, shape index: {}]   ;;  %s3702_s7 = inlined_call_operand.vmem [shape: f32[256,128], index: 7, kind: output, shape index: {0}]   ;;  %s3703_s8 = inlined_call_operand.vmem [shape: f32[384,128], index: 8, kind: output, shape index: {1}]  }
   0x1 LB: > { %s2849_s28 = sadd.s32 4294967295, %s2795_s27   ;;  %p2150_p0 = scmp.ge.s32.totalorder %s2795_s27, 1  ;;  %s2795_s27 = sphi %s2843_s27, %s19_s27  }
   0x2   : > { %p273_p1 = scmp.lt.s32.totalorder %s2795_s27, 3 }
   0x4   : > { %p274_p2 = pnand %p2150_p0, %p273_p1 }
   0x5   : > { %s2151_s29 = sshll.u32 (!%p274_p2), %s2849_s28, 4  ;;  %p2157_p4 = scmp.ne.s32.totalorder (!%p274_p2), %s2849_s28, 0 }
   0x6   : > { %277 = sbr.rel (%p274_p2) target bundleno = 881 (0x371), region = 48  ;;  %p314_p3 = scmp.lt.s32.totalorder (!%p274_p2), %s2151_s29, 31 }
   0xd   : > { %s3705_s29 = smov (!%p314_p3, %s2151_s29), 31  ;;  %336 = sbr.rel (%p2157_p4) target bundleno = 311 (0x137), region = 52 }
   0xe   : > { %s2747_s30 = smul.u32 12, %s3705_s29  ;;  %s2154_s9 = sshll.u32 %s3705_s29, 3  ;;  %v385_v0 = vld [vmem:[%s3700_s5] sm:$0xff] (!%p2157_p4)  ;;  %v386_v1 = vld [vmem:[%s3700_s5 + $0x8] sm:$0xff] (!%p2157_p4)  ;;  %v387_v2 = vld [vmem:[%s3700_s5 + $0x10] sm:$0xff] (!%p2157_p4) }
   0xf   : > { %s2857_s12 = scalar_lea.vmem %s3696_s1, %s2154_s9  ;;  %s2862_s15 = scalar_lea.vmem %s3702_s7, %s2154_s9  ;;  %v2651_v3 = vpack.c.bf16 (!%p2157_p4), %v386_v1, %v385_v0  ;;  %v388_v4 = vld [vmem:[%s3700_s5 + $0x18] sm:$0xff] (!%p2157_p4)  ;;  %v389_v6 = vld [vmem:[%s3700_s5 + $0x20] sm:$0xff] (!%p2157_p4)  ;;  %v390_v7 = vld [vmem:[%s3700_s5 + $0x28] sm:$0xff] (!%p2157_p4) }
  0x10   : > { %s2867_s18 = scalar_lea.vmem %s3695_s0, %s2747_s30  ;;  %v2655_v5 = vpack.c.bf16 (!%p2157_p4), %v388_v4, %v387_v2  ;;  %v2659_v8 = vpack.c.bf16 (!%p2157_p4), %v390_v7, %v389_v6  ;;  %v337_v9 = vld [vmem:[%s3697_s2] sm:$0xff] (!%p2157_p4)  ;;  %v391_v11 = vld [vmem:[%s3700_s5 + $0x30] sm:$0xff] (!%p2157_p4)  ;;  %v392_v12 = vld [vmem:[%s3700_s5 + $0x38] sm:$0xff] (!%p2157_p4) }
  0x11   : > { %2652 = vmatprep.subr.bf16.mxu0 (!%p2157_p4), %v2651_v3  ;;  %2715 = vmatprep.subr.bf16.mxu1 (!%p2157_p4), %v2651_v3  ;;  %v361_v10 = vld [vmem:[%s3697_s2 + $0xc0] sm:$0xff] (!%p2157_p4)  ;;  %v2663_v13 = vpack.c.bf16 (!%p2157_p4), %v392_v12, %v391_v11  ;;  %v394_v15 = vld [vmem:[%s3700_s5 + $0x48] sm:$0xff] (!%p2157_p4)  ;;  %v395_v17 = vld [vmem:[%s3700_s5 + $0x50] sm:$0xff] (!%p2157_p4) }
  0x12   : > { %2654 = vmatpush3.bf16.msra.mxu0 (!%p2157_p4), %v2651_v3  ;;  %2723 = vmatpush3.bf16.msra.mxu1 (!%p2157_p4), %v2651_v3  ;;  %v393_v14 = vld [vmem:[%s3700_s5 + $0x40] sm:$0xff] (!%p2157_p4)  ;;  %v396_v18 = vld [vmem:[%s3700_s5 + $0x58] sm:$0xff] (!%p2157_p4)  ;;  %v398_v21 = vld [vmem:[%s3700_s5 + $0x68] sm:$0xff] (!%p2157_p4) }
  0x13   : > { %2656 = vmatprep.subr.bf16.mxu0 (!%p2157_p4), %v2655_v5  ;;  %2716 = vmatprep.subr.bf16.mxu1 (!%p2157_p4), %v2655_v5  ;;  %v2667_v16 = vpack.c.bf16 (!%p2157_p4), %v394_v15, %v393_v14  ;;  %v2671_v19 = vpack.c.bf16 (!%p2157_p4), %v396_v18, %v395_v17  ;;  %v397_v20 = vld [vmem:[%s3700_s5 + $0x60] sm:$0xff] (!%p2157_p4)  ;;  %v399_v23 = vld [vmem:[%s3700_s5 + $0x70] sm:$0xff] (!%p2157_p4)  ;;  %v400_v24 = vld [vmem:[%s3700_s5 + $0x78] sm:$0xff] (!%p2157_p4) }
  0x14   : > { %2427 = vmatprep.mubr.f32.mxu0 %v337_v9  ;;  %2463 = vmatprep.mubr.f32.mxu1 %v361_v10  ;;  %v2675_v22 = vpack.c.bf16 %v398_v21, %v397_v20  ;;  %v2679_v25 = vpack.c.bf16 %v400_v24, %v399_v23  ;;  %v338_v26 = vld [vmem:[%s3697_s2 + $0x8] sm:$0xff]  ;;  %v339_v28 = vld [vmem:[%s3697_s2 + $0x10] sm:$0xff]  ;;  %v340_v30 = vld [vmem:[%s3697_s2 + $0x18] sm:$0xff] }
  0x15   : > { %v362_v27 = vld [vmem:[%s3697_s2 + $0xc8] sm:$0xff]  ;;  %v363_v29 = vld [vmem:[%s3697_s2 + $0xd0] sm:$0xff]  ;;  %v364_v31 = vld [vmem:[%s3697_s2 + $0xd8] sm:$0xff] }
  0x16   : > { %2658 = vmatpush3.bf16.msra.mxu0 %v2655_v5  ;;  %2724 = vmatpush3.bf16.msra.mxu1 %v2655_v5  ;;  %v341_v32 = vld [vmem:[%s3697_s2 + $0x20] sm:$0xff]  ;;  %v342_v34 = vld [vmem:[%s3697_s2 + $0x28] sm:$0xff]  ;;  %v343_v36 = vld [vmem:[%s3697_s2 + $0x30] sm:$0xff] }
  0x17   : > { %2660 = vmatprep.subr.bf16.mxu0 %v2659_v8  ;;  %2717 = vmatprep.subr.bf16.mxu1 %v2659_v8  ;;  %v365_v33 = vld [vmem:[%s3697_s2 + $0xe0] sm:$0xff]  ;;  %v366_v35 = vld [vmem:[%s3697_s2 + $0xe8] sm:$0xff]  ;;  %v367_v37 = vld [vmem:[%s3697_s2 + $0xf0] sm:$0xff] }
  0x18   : > { %v344_v38 = vld [vmem:[%s3697_s2 + $0x38] sm:$0xff]  ;;  %v345_v40 = vld [vmem:[%s3697_s2 + $0x40] sm:$0xff]  ;;  %v346_v42 = vld [vmem:[%s3697_s2 + $0x48] sm:$0xff] }
  0x19   : > { %v368_v39 = vld [vmem:[%s3697_s2 + $0xf8] sm:$0xff]  ;;  %v369_v41 = vld [vmem:[%s3697_s2 + $0x100] sm:$0xff]  ;;  %v370_v43 = vld [vmem:[%s3697_s2 + $0x108] sm:$0xff] }
  0x1a   : > { %2662 = vmatpush3.bf16.msra.mxu0 %v2659_v8  ;;  %2725 = vmatpush3.bf16.msra.mxu1 %v2659_v8  ;;  %v347_v44 = vld [vmem:[%s3697_s2 + $0x50] sm:$0xff]  ;;  %v348_v46 = vld [vmem:[%s3697_s2 + $0x58] sm:$0xff]  ;;  %v349_v48 = vld [vmem:[%s3697_s2 + $0x60] sm:$0xff]  ;;  %v2797_v8 = vmov 0.0  }
  0x1b   : > { %2664 = vmatprep.subr.bf16.mxu0 %v2663_v13  ;;  %2718 = vmatprep.subr.bf16.mxu1 %v2663_v13  ;;  %v371_v45 = vld [vmem:[%s3697_s2 + $0x110] sm:$0xff]  ;;  %v372_v47 = vld [vmem:[%s3697_s2 + $0x118] sm:$0xff]  ;;  %v373_v49 = vld [vmem:[%s3697_s2 + $0x120] sm:$0xff]  ;;  %761 = vst [vmem:[#allocation3] sm:$0xff] %v2797_v8 }
  0x1c   : > { %v350_v50 = vld [vmem:[%s3697_s2 + $0x68] sm:$0xff]  ;;  %v351_v52 = vld [vmem:[%s3697_s2 + $0x70] sm:$0xff]  ;;  %v352_v54 = vld [vmem:[%s3697_s2 + $0x78] sm:$0xff]  ;;  %762 = vst [vmem:[#allocation3 + $0x8] sm:$0xff] %v2797_v8 }
  0x1d   : > { %v374_v51 = vld [vmem:[%s3697_s2 + $0x128] sm:$0xff]  ;;  %v375_v53 = vld [vmem:[%s3697_s2 + $0x130] sm:$0xff]  ;;  %v376_v55 = vld [vmem:[%s3697_s2 + $0x138] sm:$0xff]  ;;  %763 = vst [vmem:[#allocation3 + $0x10] sm:$0xff] %v2797_v8 }
  0x1e   : > { %2666 = vmatpush3.bf16.msra.mxu0 %v2663_v13  ;;  %2726 = vmatpush3.bf16.msra.mxu1 %v2663_v13  ;;  %v353_v56 = vld [vmem:[%s3697_s2 + $0x80] sm:$0xff]  ;;  %v354_v58 = vld [vmem:[%s3697_s2 + $0x88] sm:$0xff]  ;;  %v355_v60 = vld [vmem:[%s3697_s2 + $0x90] sm:$0xff]  ;;  %764 = vst [vmem:[#allocation3 + $0x18] sm:$0xff] %v2797_v8 }
  0x1f   : > { %2668 = vmatprep.subr.bf16.mxu0 %v2667_v16  ;;  %2719 = vmatprep.subr.bf16.mxu1 %v2667_v16  ;;  %v377_v57 = vld [vmem:[%s3697_s2 + $0x140] sm:$0xff]  ;;  %v378_v59 = vld [vmem:[%s3697_s2 + $0x148] sm:$0xff]  ;;  %v379_v61 = vld [vmem:[%s3697_s2 + $0x150] sm:$0xff]  ;;  %765 = vst [vmem:[#allocation3 + $0x20] sm:$0xff] %v2797_v8 }
  0x20   : > { %v356_v62 = vld [vmem:[%s3697_s2 + $0x98] sm:$0xff]  ;;  %v357_v0 = vld [vmem:[%s3697_s2 + $0xa0] sm:$0xff]  ;;  %v358_v2 = vld [vmem:[%s3697_s2 + $0xa8] sm:$0xff]  ;;  %766 = vst [vmem:[#allocation3 + $0x28] sm:$0xff] %v2797_v8 }
  0x21   : > { %v380_v63 = vld [vmem:[%s3697_s2 + $0x158] sm:$0xff]  ;;  %v381_v1 = vld [vmem:[%s3697_s2 + $0x160] sm:$0xff]  ;;  %v382_v3 = vld [vmem:[%s3697_s2 + $0x168] sm:$0xff]  ;;  %767 = vst [vmem:[#allocation3 + $0x30] sm:$0xff] %v2797_v8 }
  0x22   : > { %2670 = vmatpush3.bf16.msra.mxu0 %v2667_v16  ;;  %2727 = vmatpush3.bf16.msra.mxu1 %v2667_v16  ;;  %v359_v4 = vld [vmem:[%s3697_s2 + $0xb0] sm:$0xff]  ;;  %v360_v6 = vld [vmem:[%s3697_s2 + $0xb8] sm:$0xff]  ;;  %768 = vst [vmem:[#allocation3 + $0x38] sm:$0xff] %v2797_v8  ;;  %769 = vst [vmem:[#allocation3 + $0x40] sm:$0xff] %v2797_v8 }
  0x23   : > { %2672 = vmatprep.subr.bf16.mxu0 %v2671_v19  ;;  %2720 = vmatprep.subr.bf16.mxu1 %v2671_v19  ;;  %v383_v5 = vld [vmem:[%s3697_s2 + $0x170] sm:$0xff]  ;;  %v384_v7 = vld [vmem:[%s3697_s2 + $0x178] sm:$0xff]  ;;  %770 = vst [vmem:[#allocation3 + $0x48] sm:$0xff] %v2797_v8  ;;  %771 = vst [vmem:[#allocation3 + $0x50] sm:$0xff] %v2797_v8 }
  0x24   : > { %772 = vst [vmem:[#allocation3 + $0x58] sm:$0xff] %v2797_v8  ;;  %773 = vst [vmem:[#allocation3 + $0x60] sm:$0xff] %v2797_v8  ;;  %v3065_v9 = vld [vmem:[%s3701_s6] ss:$0 sm:$0xff] }
  0x25   : > { %774 = vst [vmem:[#allocation3 + $0x68] sm:$0xff] %v2797_v8  ;;  %775 = vst [vmem:[#allocation3 + $0x70] sm:$0xff] %v2797_v8 }
  0x26   : > { %2674 = vmatpush3.bf16.msra.mxu0 %v2671_v19  ;;  %2728 = vmatpush3.bf16.msra.mxu1 %v2671_v19  ;;  %776 = vst [vmem:[#allocation3 + $0x78] sm:$0xff] %v2797_v8  ;;  %777 = vst [vmem:[#allocation3 + $0x80] sm:$0xff] %v2797_v8 }
  0x27   : > { %2676 = vmatprep.subr.bf16.mxu0 %v2675_v22  ;;  %2721 = vmatprep.subr.bf16.mxu1 %v2675_v22  ;;  %778 = vst [vmem:[#allocation3 + $0x88] sm:$0xff] %v2797_v8  ;;  %779 = vst [vmem:[#allocation3 + $0x90] sm:$0xff] %v2797_v8 }
  0x28   : > { %780 = vst [vmem:[#allocation3 + $0x98] sm:$0xff] %v2797_v8  ;;  %781 = vst [vmem:[#allocation3 + $0xa0] sm:$0xff] %v2797_v8 }
  0x29   : > { %782 = vst [vmem:[#allocation3 + $0xa8] sm:$0xff] %v2797_v8  ;;  %783 = vst [vmem:[#allocation3 + $0xb0] sm:$0xff] %v2797_v8 }
  0x2a   : > { %2678 = vmatpush3.bf16.msra.mxu0 %v2675_v22  ;;  %2729 = vmatpush3.bf16.msra.mxu1 %v2675_v22  ;;  %784 = vst [vmem:[#allocation3 + $0xb8] sm:$0xff] %v2797_v8  ;;  %785 = vst [vmem:[#allocation3 + $0xc0] sm:$0xff] %v2797_v8 }
  0x2b   : > { %2680 = vmatprep.subr.bf16.mxu0 %v2679_v25  ;;  %2722 = vmatprep.subr.bf16.mxu1 %v2679_v25  ;;  %786 = vst [vmem:[#allocation3 + $0xc8] sm:$0xff] %v2797_v8  ;;  %787 = vst [vmem:[#allocation3 + $0xd0] sm:$0xff] %v2797_v8 }
  0x2c   : > { %788 = vst [vmem:[#allocation3 + $0xd8] sm:$0xff] %v2797_v8  ;;  %789 = vst [vmem:[#allocation3 + $0xe0] sm:$0xff] %v2797_v8 }
  0x2d   : > { %790 = vst [vmem:[#allocation3 + $0xe8] sm:$0xff] %v2797_v8  ;;  %791 = vst [vmem:[#allocation3 + $0xf0] sm:$0xff] %v2797_v8 }
  0x2e   : > { %2682 = vmatpush3.bf16.msra.mxu0 %v2679_v25  ;;  %2730 = vmatpush3.bf16.msra.mxu1 %v2679_v25  ;;  %792 = vst [vmem:[#allocation3 + $0xf8] sm:$0xff] %v2797_v8  ;;  %793 = vst [vmem:[#allocation3 + $0x100] sm:$0xff] %v2797_v8 }
  0x2f   : > { %794 = vst [vmem:[#allocation3 + $0x108] sm:$0xff] %v2797_v8  ;;  %795 = vst [vmem:[#allocation3 + $0x110] sm:$0xff] %v2797_v8 }
  0x30   : > { %796 = vst [vmem:[#allocation3 + $0x118] sm:$0xff] %v2797_v8  ;;  %797 = vst [vmem:[#allocation3 + $0x120] sm:$0xff] %v2797_v8 }
  0x31   : > { %2428 = vmatmul.mubr.f32.vlgmr.msra.gmra.mrb[0].mxu0 %v338_v26  ;;  %2464 = vmatmul.mubr.f32.vlgmr.msra.gmra.mrb[0].mxu1 %v362_v27  ;;  %798 = vst [vmem:[#allocation3 + $0x128] sm:$0xff] %v2797_v8  ;;  %799 = vst [vmem:[#allocation3 + $0x130] sm:$0xff] %v2797_v8 }
  0x32   : > { %2430 = vmatprep.mubr.f32.mxu0 %v339_v28  ;;  %2466 = vmatprep.mubr.f32.mxu1 %v363_v29  ;;  %800 = vst [vmem:[#allocation3 + $0x138] sm:$0xff] %v2797_v8  ;;  %801 = vst [vmem:[#allocation3 + $0x140] sm:$0xff] %v2797_v8 }
  0x33   : > { %802 = vst [vmem:[#allocation3 + $0x148] sm:$0xff] %v2797_v8  ;;  %803 = vst [vmem:[#allocation3 + $0x150] sm:$0xff] %v2797_v8 }
  0x34   : > { %804 = vst [vmem:[#allocation3 + $0x158] sm:$0xff] %v2797_v8  ;;  %805 = vst [vmem:[#allocation3 + $0x160] sm:$0xff] %v2797_v8 }
  0x35   : > { %2431 = vmatmul.mubr.f32.gmra.mrb[2].mxu0 %v340_v30  ;;  %2467 = vmatmul.mubr.f32.gmra.mrb[2].mxu1 %v364_v31  ;;  %806 = vst [vmem:[#allocation3 + $0x168] sm:$0xff] %v2797_v8  ;;  %807 = vst [vmem:[#allocation3 + $0x170] sm:$0xff] %v2797_v8 }
  0x36   : > { %2433 = vmatprep.mubr.f32.mxu0 %v341_v32  ;;  %2469 = vmatprep.mubr.f32.mxu1 %v365_v33  ;;  %808 = vst [vmem:[#allocation3 + $0x178] sm:$0xff] %v2797_v8 }
  0x39   : > { %2434 = vmatmul.mubr.f32.gmra.mrb[4].mxu0 %v342_v34  ;;  %2470 = vmatmul.mubr.f32.gmra.mrb[4].mxu1 %v366_v35 }
  0x3a   : > { %2436 = vmatprep.mubr.f32.mxu0 %v343_v36  ;;  %2472 = vmatprep.mubr.f32.mxu1 %v367_v37 }
  0x3d   : > { %2437 = vmatmul.mubr.f32.gmra.mrb[6].mxu0 %v344_v38  ;;  %2473 = vmatmul.mubr.f32.gmra.mrb[6].mxu1 %v368_v39 }
  0x3e   : > { %2439 = vmatprep.mubr.f32.mxu0 %v345_v40  ;;  %2475 = vmatprep.mubr.f32.mxu1 %v369_v41 }
  0x41   : > { %2440 = vmatmul.mubr.f32.gmra.mrb[8].mxu0 %v346_v42  ;;  %2476 = vmatmul.mubr.f32.gmra.mrb[8].mxu1 %v370_v43 }
  0x42   : > { %2442 = vmatprep.mubr.f32.mxu0 %v347_v44  ;;  %2478 = vmatprep.mubr.f32.mxu1 %v371_v45 }
  0x45   : > { %2443 = vmatmul.mubr.f32.gmra.mrb[10].mxu0 %v348_v46  ;;  %2479 = vmatmul.mubr.f32.gmra.mrb[10].mxu1 %v372_v47 }
  0x46   : > { %2445 = vmatprep.mubr.f32.mxu0 %v349_v48  ;;  %2481 = vmatprep.mubr.f32.mxu1 %v373_v49 }
  0x49   : > { %2446 = vmatmul.mubr.f32.gmra.mrb[12].mxu0 %v350_v50  ;;  %2482 = vmatmul.mubr.f32.gmra.mrb[12].mxu1 %v374_v51 }
  0x4a   : > { %2448 = vmatprep.mubr.f32.mxu0 %v351_v52  ;;  %2484 = vmatprep.mubr.f32.mxu1 %v375_v53 }
  0x4d   : > { %2449 = vmatmul.mubr.f32.gmra.mrb[14].mxu0 %v352_v54  ;;  %2485 = vmatmul.mubr.f32.gmra.mrb[14].mxu1 %v376_v55 }
  0x4e   : > { %2451 = vmatprep.mubr.f32.mxu0 %v353_v56  ;;  %2487 = vmatprep.mubr.f32.mxu1 %v377_v57 }
  0x51   : > { %2452 = vmatmul.mubr.f32.gmra.mrb[16].mxu0 %v354_v58  ;;  %2488 = vmatmul.mubr.f32.gmra.mrb[16].mxu1 %v378_v59 }
  0x52   : > { %2454 = vmatprep.mubr.f32.mxu0 %v355_v60  ;;  %2490 = vmatprep.mubr.f32.mxu1 %v379_v61 }
  0x55   : > { %2455 = vmatmul.mubr.f32.gmra.mrb[18].mxu0 %v356_v62  ;;  %2491 = vmatmul.mubr.f32.gmra.mrb[18].mxu1 %v380_v63 }
  0x56   : > { %2457 = vmatprep.mubr.f32.mxu0 %v357_v0  ;;  %2493 = vmatprep.mubr.f32.mxu1 %v381_v1 }
  0x59   : > { %2458 = vmatmul.mubr.f32.gmra.mrb[20].mxu0 %v358_v2  ;;  %2494 = vmatmul.mubr.f32.gmra.mrb[20].mxu1 %v382_v3 }
  0x5a   : > { %2460 = vmatprep.mubr.f32.mxu0 %v359_v4  ;;  %2496 = vmatprep.mubr.f32.mxu1 %v383_v5 }
  0x5d   : > { %2461 = vmatmul.mubr.f32.gmra.mrb[22].mxu0 %v360_v6  ;;  %2497 = vmatmul.mubr.f32.gmra.mrb[22].mxu1 %v384_v7 }
 0x104   : > { %v2429_v10 = vpop.f32.mrb[0].mxu0  ;;  %v2465_v11 = vpop.f32.mrb[0].mxu1 }
 0x105   : > { %v480_v12 = vadd.f32 %v2429_v10, %v3065_v9  ;;  %v600_v13 = vadd.f32 %v2465_v11, %v3065_v9  ;;  %v474_v14 = vpop.f32.mrb[1].mxu0  ;;  %v594_v15 = vpop.f32.mrb[1].mxu1 }
 0x106   : > { %v475_v16 = vadd.f32 %v3065_v9, %v474_v14  ;;  %v595_v17 = vadd.f32 %v3065_v9, %v594_v15 }
 0x108   : > { %v713_v18 = vpack.c.bf16 %v480_v12, %v475_v16  ;;  %v725_v19 = vpack.c.bf16 %v600_v13, %v595_v17  ;;  %v2432_v20 = vpop.f32.mrb[2].mxu0  ;;  %v2468_v21 = vpop.f32.mrb[2].mxu1 }
 0x109   : > { %v490_v22 = vadd.f32 %v2432_v20, %v3065_v9  ;;  %v610_v23 = vadd.f32 %v2468_v21, %v3065_v9  ;;  %v484_v24 = vpop.f32.mrb[3].mxu0  ;;  %v604_v25 = vpop.f32.mrb[3].mxu1 }
 0x10a   : > { %737 = vst [vmem:[#allocation2] sm:$0xff] %v713_v18  ;;  %749 = vst [vmem:[#allocation2 + $0x60] sm:$0xff] %v725_v19  ;;  %v485_v26 = vadd.f32 %v3065_v9, %v484_v24  ;;  %v605_v27 = vadd.f32 %v3065_v9, %v604_v25 }
 0x10c   : > { %v714_v28 = vpack.c.bf16 %v490_v22, %v485_v26  ;;  %v726_v29 = vpack.c.bf16 %v610_v23, %v605_v27  ;;  %v2435_v30 = vpop.f32.mrb[4].mxu0  ;;  %v2471_v31 = vpop.f32.mrb[4].mxu1 }
 0x10d   : > { %v500_v32 = vadd.f32 %v2435_v30, %v3065_v9  ;;  %v620_v33 = vadd.f32 %v2471_v31, %v3065_v9  ;;  %v494_v34 = vpop.f32.mrb[5].mxu0  ;;  %v614_v35 = vpop.f32.mrb[5].mxu1 }
 0x10e   : > { %738 = vst [vmem:[#allocation2 + $0x8] sm:$0xff] %v714_v28  ;;  %750 = vst [vmem:[#allocation2 + $0x68] sm:$0xff] %v726_v29  ;;  %v495_v36 = vadd.f32 %v3065_v9, %v494_v34  ;;  %v615_v37 = vadd.f32 %v3065_v9, %v614_v35 }
 0x110   : > { %v715_v38 = vpack.c.bf16 %v500_v32, %v495_v36  ;;  %v727_v39 = vpack.c.bf16 %v620_v33, %v615_v37  ;;  %v2438_v40 = vpop.f32.mrb[6].mxu0  ;;  %v2474_v41 = vpop.f32.mrb[6].mxu1 }
 0x111   : > { %v510_v42 = vadd.f32 %v2438_v40, %v3065_v9  ;;  %v630_v43 = vadd.f32 %v2474_v41, %v3065_v9  ;;  %v504_v44 = vpop.f32.mrb[7].mxu0  ;;  %v624_v45 = vpop.f32.mrb[7].mxu1 }
 0x112   : > { %739 = vst [vmem:[#allocation2 + $0x10] sm:$0xff] %v715_v38  ;;  %751 = vst [vmem:[#allocation2 + $0x70] sm:$0xff] %v727_v39  ;;  %v505_v46 = vadd.f32 %v3065_v9, %v504_v44  ;;  %v625_v47 = vadd.f32 %v3065_v9, %v624_v45 }
 0x114   : > { %v716_v48 = vpack.c.bf16 %v510_v42, %v505_v46  ;;  %v728_v49 = vpack.c.bf16 %v630_v43, %v625_v47  ;;  %v2441_v50 = vpop.f32.mrb[8].mxu0  ;;  %v2477_v51 = vpop.f32.mrb[8].mxu1 }
 0x115   : > { %v520_v52 = vadd.f32 %v2441_v50, %v3065_v9  ;;  %v640_v53 = vadd.f32 %v2477_v51, %v3065_v9  ;;  %v514_v54 = vpop.f32.mrb[9].mxu0  ;;  %v634_v55 = vpop.f32.mrb[9].mxu1 }
 0x116   : > { %740 = vst [vmem:[#allocation2 + $0x18] sm:$0xff] %v716_v48  ;;  %752 = vst [vmem:[#allocation2 + $0x78] sm:$0xff] %v728_v49  ;;  %v515_v56 = vadd.f32 %v3065_v9, %v514_v54  ;;  %v635_v57 = vadd.f32 %v3065_v9, %v634_v55 }
 0x118   : > { %v717_v58 = vpack.c.bf16 %v520_v52, %v515_v56  ;;  %v729_v59 = vpack.c.bf16 %v640_v53, %v635_v57  ;;  %v2444_v60 = vpop.f32.mrb[10].mxu0  ;;  %v2480_v61 = vpop.f32.mrb[10].mxu1 }
 0x119   : > { %v530_v62 = vadd.f32 %v2444_v60, %v3065_v9  ;;  %v650_v63 = vadd.f32 %v2480_v61, %v3065_v9  ;;  %v524_v0 = vpop.f32.mrb[11].mxu0  ;;  %v644_v1 = vpop.f32.mrb[11].mxu1 }
 0x11a   : > { %741 = vst [vmem:[#allocation2 + $0x20] sm:$0xff] %v717_v58  ;;  %753 = vst [vmem:[#allocation2 + $0x80] sm:$0xff] %v729_v59  ;;  %v525_v2 = vadd.f32 %v3065_v9, %v524_v0  ;;  %v645_v3 = vadd.f32 %v3065_v9, %v644_v1 }
 0x11c   : > { %v718_v4 = vpack.c.bf16 %v530_v62, %v525_v2  ;;  %v730_v5 = vpack.c.bf16 %v650_v63, %v645_v3  ;;  %v2447_v6 = vpop.f32.mrb[12].mxu0  ;;  %v2483_v7 = vpop.f32.mrb[12].mxu1 }
 0x11d   : > { %v540_v8 = vadd.f32 %v2447_v6, %v3065_v9  ;;  %v660_v10 = vadd.f32 %v2483_v7, %v3065_v9  ;;  %v534_v11 = vpop.f32.mrb[13].mxu0  ;;  %v654_v12 = vpop.f32.mrb[13].mxu1 }
 0x11e   : > { %742 = vst [vmem:[#allocation2 + $0x28] sm:$0xff] %v718_v4  ;;  %754 = vst [vmem:[#allocation2 + $0x88] sm:$0xff] %v730_v5  ;;  %v535_v13 = vadd.f32 %v3065_v9, %v534_v11  ;;  %v655_v14 = vadd.f32 %v3065_v9, %v654_v12 }
 0x120   : > { %v719_v15 = vpack.c.bf16 %v540_v8, %v535_v13  ;;  %v731_v16 = vpack.c.bf16 %v660_v10, %v655_v14  ;;  %v2450_v17 = vpop.f32.mrb[14].mxu0  ;;  %v2486_v18 = vpop.f32.mrb[14].mxu1 }
 0x121   : > { %v550_v19 = vadd.f32 %v2450_v17, %v3065_v9  ;;  %v670_v20 = vadd.f32 %v2486_v18, %v3065_v9  ;;  %v544_v21 = vpop.f32.mrb[15].mxu0  ;;  %v664_v22 = vpop.f32.mrb[15].mxu1 }
 0x122   : > { %743 = vst [vmem:[#allocation2 + $0x30] sm:$0xff] %v719_v15  ;;  %755 = vst [vmem:[#allocation2 + $0x90] sm:$0xff] %v731_v16  ;;  %v545_v23 = vadd.f32 %v3065_v9, %v544_v21  ;;  %v665_v24 = vadd.f32 %v3065_v9, %v664_v22 }
 0x124   : > { %v720_v25 = vpack.c.bf16 %v550_v19, %v545_v23  ;;  %v732_v26 = vpack.c.bf16 %v670_v20, %v665_v24  ;;  %v2453_v27 = vpop.f32.mrb[16].mxu0  ;;  %v2489_v28 = vpop.f32.mrb[16].mxu1 }
 0x125   : > { %v560_v29 = vadd.f32 %v2453_v27, %v3065_v9  ;;  %v680_v30 = vadd.f32 %v2489_v28, %v3065_v9  ;;  %v554_v31 = vpop.f32.mrb[17].mxu0  ;;  %v674_v32 = vpop.f32.mrb[17].mxu1 }
 0x126   : > { %744 = vst [vmem:[#allocation2 + $0x38] sm:$0xff] %v720_v25  ;;  %756 = vst [vmem:[#allocation2 + $0x98] sm:$0xff] %v732_v26  ;;  %v555_v33 = vadd.f32 %v3065_v9, %v554_v31  ;;  %v675_v34 = vadd.f32 %v3065_v9, %v674_v32 }
 0x128   : > { %v721_v35 = vpack.c.bf16 %v560_v29, %v555_v33  ;;  %v733_v36 = vpack.c.bf16 %v680_v30, %v675_v34  ;;  %v2456_v37 = vpop.f32.mrb[18].mxu0  ;;  %v2492_v38 = vpop.f32.mrb[18].mxu1 }
 0x129   : > { %v570_v39 = vadd.f32 %v2456_v37, %v3065_v9  ;;  %v690_v40 = vadd.f32 %v2492_v38, %v3065_v9  ;;  %v564_v41 = vpop.f32.mrb[19].mxu0  ;;  %v684_v42 = vpop.f32.mrb[19].mxu1 }
 0x12a   : > { %745 = vst [vmem:[#allocation2 + $0x40] sm:$0xff] %v721_v35  ;;  %757 = vst [vmem:[#allocation2 + $0xa0] sm:$0xff] %v733_v36  ;;  %v565_v43 = vadd.f32 %v3065_v9, %v564_v41  ;;  %v685_v44 = vadd.f32 %v3065_v9, %v684_v42 }
 0x12c   : > { %v722_v45 = vpack.c.bf16 %v570_v39, %v565_v43  ;;  %v734_v46 = vpack.c.bf16 %v690_v40, %v685_v44  ;;  %v2459_v47 = vpop.f32.mrb[20].mxu0  ;;  %v2495_v48 = vpop.f32.mrb[20].mxu1 }
 0x12d   : > { %v580_v49 = vadd.f32 %v2459_v47, %v3065_v9  ;;  %v700_v50 = vadd.f32 %v2495_v48, %v3065_v9  ;;  %v574_v51 = vpop.f32.mrb[21].mxu0  ;;  %v694_v52 = vpop.f32.mrb[21].mxu1 }
 0x12e   : > { %746 = vst [vmem:[#allocation2 + $0x48] sm:$0xff] %v722_v45  ;;  %758 = vst [vmem:[#allocation2 + $0xa8] sm:$0xff] %v734_v46  ;;  %v575_v53 = vadd.f32 %v3065_v9, %v574_v51  ;;  %v695_v54 = vadd.f32 %v3065_v9, %v694_v52 }
 0x130   : > { %v723_v55 = vpack.c.bf16 %v580_v49, %v575_v53  ;;  %v735_v56 = vpack.c.bf16 %v700_v50, %v695_v54  ;;  %v2462_v57 = vpop.f32.mrb[22].mxu0  ;;  %v2498_v58 = vpop.f32.mrb[22].mxu1 }
 0x131   : > { %v590_v59 = vadd.f32 %v2462_v57, %v3065_v9  ;;  %v710_v60 = vadd.f32 %v2498_v58, %v3065_v9  ;;  %v584_v61 = vpop.f32.mrb[23].mxu0  ;;  %v704_v62 = vpop.f32.mrb[23].mxu1 }
 0x132   : > { %747 = vst [vmem:[#allocation2 + $0x50] sm:$0xff] %v723_v55  ;;  %759 = vst [vmem:[#allocation2 + $0xb0] sm:$0xff] %v735_v56  ;;  %v585_v63 = vadd.f32 %v3065_v9, %v584_v61  ;;  %v705_v0 = vadd.f32 %v3065_v9, %v704_v62 }
 0x134   : > { %v724_v1 = vpack.c.bf16 %v590_v59, %v585_v63  ;;  %v736_v2 = vpack.c.bf16 %v710_v60, %v705_v0 }
 0x136   : > { %748 = vst [vmem:[#allocation2 + $0x58] sm:$0xff] %v724_v1  ;;  %760 = vst [vmem:[#allocation2 + $0xb8] sm:$0xff] %v736_v2 }
 0x137 PF: > { %v857_v3 = vld [vmem:[%s3698_s3] sm:$0xff]  ;;  %v858_v4 = vld [vmem:[%s3698_s3 + $0x8] sm:$0xff]  ;;  %v859_v5 = vld [vmem:[%s3698_s3 + $0x10] sm:$0xff]  ;;  %p2184_p5 = scmp.ne.s32.totalorder %s2849_s28, 1 }
 0x138   : > { %v2683_v6 = vpack.c.bf16 %v858_v4, %v857_v3  ;;  %v860_v9 = vld [vmem:[%s3698_s3 + $0x18] sm:$0xff]  ;;  %v861_v8 = vld [vmem:[%s3698_s3 + $0x20] sm:$0xff]  ;;  %v862_v10 = vld [vmem:[%s3698_s3 + $0x28] sm:$0xff] }
 0x139   : > { %v2687_v7 = vpack.c.bf16 %v860_v9, %v859_v5  ;;  %v2691_v11 = vpack.c.bf16 %v862_v10, %v861_v8  ;;  %v3134_v12 = vld [vmem:[%s2857_s12] sm:$0xff]  ;;  %v863_v13 = vld [vmem:[%s3698_s3 + $0x30] sm:$0xff]  ;;  %v864_v14 = vld [vmem:[%s3698_s3 + $0x38] sm:$0xff] }
 0x13a   : > { %2684 = vmatprep.subr.bf16.mxu0 %v2683_v6  ;;  %2531 = vmatprep.mubr.f32.mxu0 %v3134_v12  ;;  %v2695_v15 = vpack.c.bf16 %v864_v14, %v863_v13  ;;  %v865_v16 = vld [vmem:[%s3698_s3 + $0x40] sm:$0xff]  ;;  %v866_v17 = vld [vmem:[%s3698_s3 + $0x48] sm:$0xff]  ;;  %v867_v19 = vld [vmem:[%s3698_s3 + $0x50] sm:$0xff] }
 0x13b   : > { %2686 = vmatpush3.bf16.msra.mxu0 %v2683_v6  ;;  %v3150_v18 = vld [vmem:[%s2867_s18] ss:$12 sps:$4 sm:$0xff]   ;;  %v2699_v20 = vpack.c.bf16 %v866_v17, %v865_v16  ;;  %v3157_v21 = vld [vmem:[%s2867_s18 + $0x18] ss:$12 sps:$4 sm:$0xff]   ;;  %v3164_v24 = vld [vmem:[%s2867_s18 + $0x1c] ss:$12 sps:$4 sm:$0xff]  }
 0x13c   : > { %2688 = vmatprep.subr.bf16.mxu0 %v2687_v7  ;;  %1459 = vxpose.xlu1.c.b16.start [1/8] %v3150_v18, 128  ;;  %v868_v22 = vld [vmem:[%s3698_s3 + $0x58] sm:$0xff]  ;;  %v2765_v23 = vld [vmem:[%s2867_s18 + $0x4] ss:$12 sps:$4 sm:$0xff]   ;;  %v870_v28 = vld [vmem:[%s3698_s3 + $0x68] sm:$0xff] }
 0x13d   : > { %1475 = vxpose.xlu0.c.b16.start [1/8] %v2765_v23, 128  ;;  %v2703_v25 = vpack.c.bf16 %v868_v22, %v867_v19  ;;  %v3168_v26 = vld [vmem:[%s2867_s18 + $0x30] ss:$12 sps:$4 sm:$0xff]   ;;  %v869_v27 = vld [vmem:[%s3698_s3 + $0x60] sm:$0xff]  ;;  %1209 = vmatprep.mubr.bf16.mxu1 %v2765_v23  ;;  %v3182_v32 = vld [vmem:[%s2867_s18 + $0x48] ss:$12 sps:$4 sm:$0xff]  }
 0x13e   : > { %v3178_v29 = vld [vmem:[%s2867_s18 + $0x34] ss:$12 sps:$4 sm:$0xff]   ;;  %v2707_v31 = vpack.c.bf16 %v870_v28, %v869_v27  ;;  %v872_v35 = vld [vmem:[%s3698_s3 + $0x78] sm:$0xff]  ;;  %v1034_v36 = vld [vmem:[#allocation2 + $0x48] sm:$0xff] }
 0x13f   : > { %2690 = vmatpush3.bf16.msra.mxu0 %v2687_v7  ;;  %v1033_v30 = vld [vmem:[#allocation2 + $0x40] sm:$0xff]  ;;  %v871_v34 = vld [vmem:[%s3698_s3 + $0x70] sm:$0xff]  ;;  %v3192_v37 = vld [vmem:[%s2867_s18 + $0x4c] ss:$12 sps:$4 sm:$0xff]  }
 0x140   : > { %2692 = vmatprep.subr.bf16.mxu0 %v2691_v11  ;;  %1460 = vxpose.xlu1.c.b16.cont [2/8] %v3157_v21, 128  ;;  %v1025_v33 = vld [vmem:[#allocation2] sm:$0xff]  ;;  %v1026_v38 = vld [vmem:[#allocation2 + $0x8] sm:$0xff]  ;;  %v2711_v39 = vpack.c.bf16 %v872_v35, %v871_v34  ;;  %v1035_v41 = vld [vmem:[#allocation2 + $0x50] sm:$0xff] }
 0x141   : > { %1476 = vxpose.xlu0.c.b16.cont [2/8] %v3164_v24, 128  ;;  %2283 = vmatprep.subr.bf16.mxu1 %v1033_v30  ;;  %v3196_v40 = vld [vmem:[%s2867_s18 + $0x60] ss:$12 sps:$4 sm:$0xff]   ;;  %v3200_v42 = vld [vmem:[%s2867_s18 + $0x64] ss:$12 sps:$4 sm:$0xff]   ;;  %v1036_v47 = vld [vmem:[#allocation2 + $0x58] sm:$0xff] }
 0x142   : > { %2284 = vmatpush3.bf16.msra.mxu1 %v1025_v33  ;;  %v1027_v43 = vld [vmem:[#allocation2 + $0x10] sm:$0xff]  ;;  %v3204_v44 = vld [vmem:[%s2867_s18 + $0x78] ss:$12 sps:$4 sm:$0xff]   ;;  %v3207_v46 = vld [vmem:[%s2857_s12 + $0x8] sm:$0xff] }
 0x143   : > { %2694 = vmatpush3.bf16.msra.mxu0 %v2691_v11  ;;  %2285 = vmatprep.subr.bf16.mxu1 %v1034_v36  ;;  %v1041_v45 = vld [vmem:[#allocation2 + $0x80] sm:$0xff]  ;;  %v3211_v48 = vld [vmem:[%s2867_s18 + $0x7c] ss:$12 sps:$4 sm:$0xff]   ;;  %v3214_v50 = vld [vmem:[%s2857_s12 + $0x10] sm:$0xff] }
 0x144   : > { %2696 = vmatprep.subr.bf16.mxu0 %v2695_v15  ;;  %1461 = vxpose.xlu1.c.b16.cont [3/8] %v3168_v26, 128  ;;  %v1028_v49 = vld [vmem:[#allocation2 + $0x18] sm:$0xff]  ;;  %v1042_v53 = vld [vmem:[#allocation2 + $0x88] sm:$0xff]  ;;  %v1037_v54 = vld [vmem:[#allocation2 + $0x60] sm:$0xff] }
 0x145   : > { %1477 = vxpose.xlu0.c.b16.cont [3/8] %v3178_v29, 128  ;;  %v3218_v51 = vld [vmem:[%s2867_s18 + $0x90] ss:$12 sps:$4 sm:$0xff]   ;;  %v3227_v55 = vld [vmem:[%s2867_s18 + $0x94] ss:$12 sps:$4 sm:$0xff]   ;;  %v1038_v60 = vld [vmem:[#allocation2 + $0x68] sm:$0xff] }
 0x146   : > { %2286 = vmatpush3.bf16.msra.mxu1 %v1026_v38  ;;  %v3221_v52 = vld [vmem:[%s2857_s12 + $0x18] sm:$0xff]  ;;  %v1029_v56 = vld [vmem:[#allocation2 + $0x20] sm:$0xff]  ;;  %v3234_v58 = vld [vmem:[%s2867_s18 + $0xa8] ss:$12 sps:$4 sm:$0xff]  }
 0x147   : > { %2698 = vmatpush3.bf16.msra.mxu0 %v2695_v15  ;;  %2287 = vmatprep.subr.bf16.mxu1 %v1035_v41  ;;  %v3230_v57 = vld [vmem:[%s2857_s12 + $0x20] sm:$0xff]  ;;  %v1043_v59 = vld [vmem:[#allocation2 + $0x90] sm:$0xff]  ;;  %v3239_v61 = vld [vmem:[%s2857_s12 + $0x28] sm:$0xff] }
 0x148   : > { %2700 = vmatprep.subr.bf16.mxu0 %v2699_v20  ;;  %1462 = vxpose.xlu1.c.b16.cont [4/8] %v3182_v32, 128  ;;  %v3243_v62 = vld [vmem:[%s2867_s18 + $0xac] ss:$12 sps:$4 sm:$0xff]   ;;  %v3246_v0 = vld [vmem:[%s2857_s12 + $0x30] sm:$0xff]  ;;  %v3257_v6 = vld [vmem:[%s2857_s12 + $0x40] sm:$0xff] }
 0x149   : > { %1478 = vxpose.xlu0.c.b16.cont [4/8] %v3192_v37, 128  ;;  %v1030_v63 = vld [vmem:[#allocation2 + $0x28] sm:$0xff]  ;;  %v1039_v1 = vld [vmem:[#allocation2 + $0x70] sm:$0xff]  ;;  %v1044_v2 = vld [vmem:[#allocation2 + $0x98] sm:$0xff] }
 0x14a   : > { %2288 = vmatpush3.bf16.msra.mxu1 %v1027_v43  ;;  %v3252_v3 = vld [vmem:[%s2857_s12 + $0x38] sm:$0xff]  ;;  %v2781_v4 = vld [vmem:[%s2867_s18 + $0x8] ss:$12 sps:$4 sm:$0xff]   ;;  %v1045_v7 = vld [vmem:[#allocation2 + $0xa0] sm:$0xff] }
 0x14b   : > { %2702 = vmatpush3.bf16.msra.mxu0 %v2699_v20  ;;  %2289 = vmatprep.subr.bf16.mxu1 %v1036_v47  ;;  %v1031_v5 = vld [vmem:[#allocation2 + $0x30] sm:$0xff]  ;;  %v1040_v9 = vld [vmem:[#allocation2 + $0x78] sm:$0xff]  ;;  %v3262_v8 = vld [vmem:[%s2857_s12 + $0x48] sm:$0xff] }
 0x14c   : > { %2704 = vmatprep.subr.bf16.mxu0 %v2703_v25  ;;  %1463 = vxpose.xlu1.c.b16.cont [5/8] %v3196_v40, 128  ;;  %v2782_v10 = vld [vmem:[%s2867_s18 + $0x20] ss:$12 sps:$4 sm:$0xff]   ;;  %v1032_v11 = vld [vmem:[#allocation2 + $0x38] sm:$0xff]  ;;  %v3266_v13 = vld [vmem:[%s2857_s12 + $0x50] sm:$0xff] }
 0x14d   : > { %1479 = vxpose.xlu0.c.b16.cont [5/8] %v3200_v42, 128  ;;  %v1046_v14 = vld [vmem:[#allocation2 + $0xa8] sm:$0xff]  ;;  %v3271_v15 = vld [vmem:[%s2857_s12 + $0x58] sm:$0xff]  ;;  %v3275_v17 = vld [vmem:[%s2857_s12 + $0x60] sm:$0xff] }
 0x14e   : > { %2290 = vmatpush3.bf16.msra.mxu1 %v1028_v49  ;;  %v2783_v16 = vld [vmem:[%s2867_s18 + $0x38] ss:$12 sps:$4 sm:$0xff]   ;;  %v1047_v19 = vld [vmem:[#allocation2 + $0xb0] sm:$0xff]  ;;  %v3282_v20 = vld [vmem:[%s2857_s12 + $0x68] sm:$0xff] }
 0x14f   : > { %2706 = vmatpush3.bf16.msra.mxu0 %v2703_v25  ;;  %2291 = vmatprep.subr.bf16.mxu1 %v1037_v54  ;;  %v2784_v22 = vld [vmem:[%s2867_s18 + $0x50] ss:$12 sps:$4 sm:$0xff]   ;;  %v2786_v25 = vld [vmem:[%s2867_s18 + $0x80] ss:$12 sps:$4 sm:$0xff]  }
 0x150   : > { %2708 = vmatprep.subr.bf16.mxu0 %v2707_v31  ;;  %1464 = vxpose.xlu1.c.b16.cont [6/8] %v3204_v44, 128  ;;  %v3286_v23 = vld [vmem:[%s2857_s12 + $0x70] sm:$0xff]  ;;  %v1048_v27 = vld [vmem:[#allocation2 + $0xb8] sm:$0xff]  ;;  %v3322_v34 = vld [vmem:[%s3699_s4] ss:$0 sm:$0xff] }
 0x151   : > { %1480 = vxpose.xlu0.c.b16.cont [6/8] %v3211_v48, 128  ;;  %v2788_v28 = vld [vmem:[%s2867_s18 + $0xb0] ss:$12 sps:$4 sm:$0xff]  }
 0x152   : > { %2292 = vmatpush3.bf16.msra.mxu1 %v1029_v56 }
 0x153   : > { %2710 = vmatpush3.bf16.msra.mxu0 %v2707_v31  ;;  %2293 = vmatprep.subr.bf16.mxu1 %v1038_v60 }
 0x154   : > { %2712 = vmatprep.subr.bf16.mxu0 %v2711_v39  ;;  %1465 = vxpose.xlu1.c.b16.cont [7/8] %v3218_v51, 128 }
 0x155   : > { %1481 = vxpose.xlu0.c.b16.cont [7/8] %v3227_v55, 128 }
 0x156   : > { %2294 = vmatpush3.bf16.msra.mxu1 %v1030_v63 }
 0x157   : > { %2714 = vmatpush3.bf16.msra.mxu0 %v2711_v39  ;;  %2295 = vmatprep.subr.bf16.mxu1 %v1039_v1 }
 0x158   : > { %2555 = vmatprep.subr.bf16.mxu0 %v1041_v45  ;;  %1466 = vxpose.xlu1.c.b16.end [8/8] %v3234_v58, 128 }
 0x159   : > { %1482 = vxpose.xlu0.c.b16.end [8/8] %v3243_v62, 128 }
 0x15a   : > { %2532 = vmatmul.mubr.f32.vlgmr.msra.gmra.mrb[0].mxu0 %v3207_v46  ;;  %2296 = vmatpush3.bf16.msra.mxu1 %v1031_v5 }
 0x15b   : > { %2534 = vmatprep.mubr.f32.mxu0 %v3214_v50  ;;  %2556 = vmatpush3.bf16.msra.mxu0 %v1041_v45 }
 0x15c   : > { %2557 = vmatprep.subr.bf16.mxu0 %v1042_v53  ;;  %2297 = vmatprep.subr.bf16.mxu1 %v1040_v9 }
 0x15d   : > { %1491 = vxpose.xlu0.c.b16.start [1/8] %v2781_v4, 128 }
 0x15e   : > { %2535 = vmatmul.mubr.f32.gmra.mrb[2].mxu0 %v3221_v52  ;;  %2298 = vmatpush3.bf16.msra.mxu1 %v1032_v11 }
 0x15f   : > { %2537 = vmatprep.mubr.f32.mxu0 %v3230_v57  ;;  %2558 = vmatpush3.bf16.msra.mxu0 %v1042_v53 }
 0x160   : > { %2559 = vmatprep.subr.bf16.mxu0 %v1043_v59 }
 0x161   : > { %1492 = vxpose.xlu0.c.b16.cont [2/8] %v2782_v10, 128  ;;  %1210 = vmatmul.mubr.bf16.vlgmr.msra.gmra.mrb[0].mxu1 %v3150_v18  ;;  %v3291_v18 = vld [vmem:[%s2857_s12 + $0x78] sm:$0xff] }
 0x162   : > { %2538 = vmatmul.mubr.f32.gmra.mrb[4].mxu0 %v3239_v61  ;;  %1217 = vmatprep.mubr.bf16.mxu1 %v3164_v24  ;;  %v2785_v24 = vld [vmem:[%s2867_s18 + $0x68] ss:$12 sps:$4 sm:$0xff]  }
 0x163   : > { %2540 = vmatprep.mubr.f32.mxu0 %v3246_v0  ;;  %2560 = vmatpush3.bf16.msra.mxu0 %v1043_v59 }
 0x164   : > { %2561 = vmatprep.subr.bf16.mxu0 %v1044_v2 }
 0x165   : > { %1493 = vxpose.xlu0.c.b16.cont [3/8] %v2783_v16, 128 }
 0x166   : > { %2541 = vmatmul.mubr.f32.gmra.mrb[6].mxu0 %v3252_v3 }
 0x167   : > { %2543 = vmatprep.mubr.f32.mxu0 %v3257_v6  ;;  %2562 = vmatpush3.bf16.msra.mxu0 %v1044_v2 }
 0x168   : > { %2563 = vmatprep.subr.bf16.mxu0 %v1045_v7 }
 0x169   : > { %1494 = vxpose.xlu0.c.b16.cont [4/8] %v2784_v22, 128  ;;  %1218 = vmatmul.mubr.bf16.gmra.mrb[4].mxu1 %v3157_v21  ;;  %v2787_v21 = vld [vmem:[%s2867_s18 + $0x98] ss:$12 sps:$4 sm:$0xff]  }
 0x16a   : > { %2544 = vmatmul.mubr.f32.gmra.mrb[8].mxu0 %v3262_v8  ;;  %1225 = vmatprep.mubr.bf16.mxu1 %v3178_v29 }
 0x16b   : > { %2546 = vmatprep.mubr.f32.mxu0 %v3266_v13  ;;  %2564 = vmatpush3.bf16.msra.mxu0 %v1045_v7 }
 0x16c   : > { %2565 = vmatprep.subr.bf16.mxu0 %v1046_v14 }
 0x16d   : > { %1495 = vxpose.xlu0.c.b16.cont [5/8] %v2785_v24, 128 }
 0x16e   : > { %2547 = vmatmul.mubr.f32.gmra.mrb[10].mxu0 %v3271_v15 }
 0x16f   : > { %2549 = vmatprep.mubr.f32.mxu0 %v3275_v17  ;;  %2566 = vmatpush3.bf16.msra.mxu0 %v1046_v14 }
 0x170   : > { %2567 = vmatprep.subr.bf16.mxu0 %v1047_v19 }
 0x171   : > { %1496 = vxpose.xlu0.c.b16.cont [6/8] %v2786_v25, 128  ;;  %1226 = vmatmul.mubr.bf16.gmra.mrb[8].mxu1 %v3168_v26 }
 0x172   : > { %2550 = vmatmul.mubr.f32.gmra.mrb[12].mxu0 %v3282_v20  ;;  %1233 = vmatprep.mubr.bf16.mxu1 %v3192_v37 }
 0x173   : > { %2552 = vmatprep.mubr.f32.mxu0 %v3286_v23  ;;  %2568 = vmatpush3.bf16.msra.mxu0 %v1047_v19 }
 0x174   : > { %2569 = vmatprep.subr.bf16.mxu0 %v1048_v27 }
 0x175   : > { %1497 = vxpose.xlu0.c.b16.cont [7/8] %v2787_v21, 128 }
 0x176   : > { %2553 = vmatmul.mubr.f32.gmra.mrb[14].mxu0 %v3291_v18 }
 0x177   : > { %2571 = vmatprep.mubr.bf16.mxu0 %v2781_v4  ;;  %2570 = vmatpush3.bf16.msra.mxu0 %v1048_v27 }
 0x179   : > { %1234 = vmatmul.mubr.bf16.gmra.mrb[12].mxu1 %v3182_v32  ;;  %1498 = vxpose.xlu0.c.b16.end [8/8] %v2788_v28, 128 }
 0x17a   : > { %1241 = vmatprep.mubr.bf16.mxu1 %v3200_v42  ;;  %2572 = vmatmul.mubr.bf16.vlgmr.msra.gmra.mrb[16].mxu0 %v2782_v10 }
 0x17b   : > { %2575 = vmatprep.mubr.bf16.mxu0 %v2783_v16 }
 0x181   : > { %1242 = vmatmul.mubr.bf16.gmra.mrb[16].mxu1 %v3196_v40 }
 0x182   : > { %1249 = vmatprep.mubr.bf16.mxu1 %v3211_v48  ;;  %2576 = vmatmul.mubr.bf16.gmra.mrb[20].mxu0 %v2784_v22 }
 0x183   : > { %2579 = vmatprep.mubr.bf16.mxu0 %v2785_v24 }
 0x189   : > { %1250 = vmatmul.mubr.bf16.gmra.mrb[20].mxu1 %v3204_v44 }
 0x18a   : > { %1257 = vmatprep.mubr.bf16.mxu1 %v3227_v55  ;;  %2580 = vmatmul.mubr.bf16.gmra.mrb[24].mxu0 %v2786_v25 }
 0x18b   : > { %2583 = vmatprep.mubr.bf16.mxu0 %v2787_v21 }
 0x191   : > { %1258 = vmatmul.mubr.bf16.gmra.mrb[24].mxu1 %v3218_v51 }
 0x192   : > { %1265 = vmatprep.mubr.bf16.mxu1 %v3243_v62  ;;  %2584 = vmatmul.mubr.bf16.gmra.mrb[28].mxu0 %v2788_v28 }
 0x199   : > { %1266 = vmatmul.mubr.bf16.gmra.mrb[28].mxu1 %v3234_v58 }
 0x1a2   : > { %v1467_v32 = vpop.trf.xlu1 }
 0x1a3   : > { %v3311_v26 = vpop.trf.xlu0  ;;  %2603 = vmatprep.mubr.bf16.mxu0 %v1467_v32 }
 0x1a6   : > { %v1468_v4 = vpop.trf.xlu1 }
 0x1a7   : > { %v3313_v29 = vpop.trf.xlu0 }
 0x1ab   : > { %v3315_v30 = vpop.trf.xlu0 }
 0x1af   : > { %v3317_v31 = vpop.trf.xlu0 }
 0x1b3   : > { %v1487_v33 = vpop.trf.xlu0 }
 0x1b4   : > { %2627 = vmatprep.mubr.bf16.mxu1 %v1487_v33 }
 0x1b7   : > { %v3328_v44 = vpop.trf.xlu0 }
 0x1bb   : > { %v3333_v58 = vpop.trf.xlu0 }
 0x1bf   : > { %v3338_v5 = vpop.trf.xlu0 }
 0x22d   : > { %v2533_v35 = vpop.f32.mrb[0].mxu0 }
 0x22e   : > { %v952_v36 = vadd.f32 %v2533_v35, %v3322_v34  ;;  %v946_v37 = vpop.f32.mrb[1].mxu0 }
 0x22f   : > { %v947_v38 = vadd.f32 %v3322_v34, %v946_v37  ;;  %v1499_v37 = vpop.trf.xlu0 }
 0x231   : > { %v1451_v39 = vpack.c.bf16 %v952_v36, %v947_v38  ;;  %v2536_v40 = vpop.f32.mrb[2].mxu0  ;;  %v1469_v36 = vpop.trf.xlu1 }
 0x232   : > { %v962_v41 = vadd.f32 %v2536_v40, %v3322_v34  ;;  %v956_v42 = vpop.f32.mrb[3].mxu0 }
 0x233   : > { %v957_v43 = vadd.f32 %v3322_v34, %v956_v42  ;;  %2587 = vmatprep.subr.bf16.mxu0 %v1451_v39  ;;  %2731 = vmatprep.subr.bf16.mxu1 %v1451_v39 }
 0x234   : > { %2588 = vmatpush3.bf16.msra.mxu0 %v1451_v39  ;;  %2739 = vmatpush3.bf16.msra.mxu1 %v1451_v39  ;;  %v2299_v9 = vpop.f32.mrb[0].mxu1 }
 0x235   : > { %v1452_v45 = vpack.c.bf16 %v962_v41, %v957_v43  ;;  %v2539_v47 = vpop.f32.mrb[4].mxu0  ;;  %v2300_v11 = vpop.f32.mrb[1].mxu1 }
 0x236   : > { %v972_v48 = vadd.f32 %v2539_v47, %v3322_v34  ;;  %v966_v49 = vpop.f32.mrb[5].mxu0  ;;  %v3341_v19 = vadd.f32 %v2300_v11, %v2299_v9  ;;  %v2302_v22 = vpop.f32.mrb[2].mxu1 }
 0x237   : > { %v967_v51 = vadd.f32 %v3322_v34, %v966_v49  ;;  %2589 = vmatprep.subr.bf16.mxu0 %v1452_v45  ;;  %2732 = vmatprep.subr.bf16.mxu1 %v1452_v45  ;;  %v2303_v25 = vpop.f32.mrb[3].mxu1 }
 0x238   : > { %2590 = vmatpush3.bf16.msra.mxu0 %v1452_v45  ;;  %2740 = vmatpush3.bf16.msra.mxu1 %v1452_v45  ;;  %v3344_v21 = vadd.f32 %v2303_v25, %v2302_v22 }
 0x239   : > { %v1453_v53 = vpack.c.bf16 %v972_v48, %v967_v51  ;;  %v2542_v54 = vpop.f32.mrb[6].mxu0 }
 0x23a   : > { %v982_v55 = vadd.f32 %v2542_v54, %v3322_v34  ;;  %v976_v56 = vpop.f32.mrb[7].mxu0  ;;  %v1470_v54 = vpop.trf.xlu1 }
 0x23b   : > { %v977_v59 = vadd.f32 %v3322_v34, %v976_v56  ;;  %2591 = vmatprep.subr.bf16.mxu0 %v1453_v53  ;;  %2733 = vmatprep.subr.bf16.mxu1 %v1453_v53 }
 0x23c   : > { %2592 = vmatpush3.bf16.msra.mxu0 %v1453_v53  ;;  %2741 = vmatpush3.bf16.msra.mxu1 %v1453_v53  ;;  %v2305_v38 = vpop.f32.mrb[4].mxu1 }
 0x23d   : > { %v1454_v60 = vpack.c.bf16 %v982_v55, %v977_v59  ;;  %v2545_v62 = vpop.f32.mrb[8].mxu0  ;;  %v2306_v41 = vpop.f32.mrb[5].mxu1 }
 0x23e   : > { %v992_v63 = vadd.f32 %v2545_v62, %v3322_v34  ;;  %v986_v1 = vpop.f32.mrb[9].mxu0  ;;  %v2307_v45 = vadd.f32 %v2306_v41, %v2305_v38  ;;  %v2308_v47 = vpop.f32.mrb[6].mxu1 }
 0x23f   : > { %v987_v2 = vadd.f32 %v3322_v34, %v986_v1  ;;  %2593 = vmatprep.subr.bf16.mxu0 %v1454_v60  ;;  %2734 = vmatprep.subr.bf16.mxu1 %v1454_v60  ;;  %v2309_v49 = vpop.f32.mrb[7].mxu1  ;;  %v1500_v55 = vpop.trf.xlu0 }
 0x240   : > { %2594 = vmatpush3.bf16.msra.mxu0 %v1454_v60  ;;  %2742 = vmatpush3.bf16.msra.mxu1 %v1454_v60  ;;  %v2310_v51 = vadd.f32 %v2309_v49, %v2308_v47 }
 0x241   : > { %v1455_v7 = vpack.c.bf16 %v992_v63, %v987_v2  ;;  %v2548_v10 = vpop.f32.mrb[10].mxu0  ;;  %v1471_v63 = vpop.trf.xlu1 }
 0x242   : > { %v1002_v14 = vadd.f32 %v2548_v10, %v3322_v34  ;;  %v996_v16 = vpop.f32.mrb[11].mxu0 }
 0x243   : > { %v997_v24 = vadd.f32 %v3322_v34, %v996_v16  ;;  %2595 = vmatprep.subr.bf16.mxu0 %v1455_v7  ;;  %2735 = vmatprep.subr.bf16.mxu1 %v1455_v7  ;;  %v1501_v2 = vpop.trf.xlu0 }
 0x244   : > { %2596 = vmatpush3.bf16.msra.mxu0 %v1455_v7  ;;  %2743 = vmatpush3.bf16.msra.mxu1 %v1455_v7  ;;  %v2311_v56 = vpop.f32.mrb[8].mxu1 }
 0x245   : > { %v1456_v27 = vpack.c.bf16 %v1002_v14, %v997_v24  ;;  %v2551_v28 = vpop.f32.mrb[12].mxu0  ;;  %v2312_v59 = vpop.f32.mrb[9].mxu1 }
 0x246   : > { %v1012_v32 = vadd.f32 %v2551_v28, %v3322_v34  ;;  %v1006_v33 = vpop.f32.mrb[13].mxu0  ;;  %v3350_v60 = vadd.f32 %v2312_v59, %v2311_v56  ;;  %v2314_v62 = vpop.f32.mrb[10].mxu1 }
 0x247   : > { %v1007_v35 = vadd.f32 %v3322_v34, %v1006_v33  ;;  %2597 = vmatprep.subr.bf16.mxu0 %v1456_v27  ;;  %2736 = vmatprep.subr.bf16.mxu1 %v1456_v27  ;;  %v1472_v10 = vpop.trf.xlu1  ;;  %v1502_v16 = vpop.trf.xlu0  ;;  %v1220_v33 = vadd.f32 %v2307_v45, %v3214_v50 }
 0x248   : > { %2598 = vmatpush3.bf16.msra.mxu0 %v1456_v27  ;;  %2744 = vmatpush3.bf16.msra.mxu1 %v1456_v27  ;;  %v1228_v59 = vadd.f32 %v3350_v60, %v3230_v57 }
 0x249   : > { %v1457_v39 = vpack.c.bf16 %v1012_v32, %v1007_v35  ;;  %v2554_v40 = vpop.f32.mrb[14].mxu0  ;;  %v1212_v35 = vadd.f32 %v3341_v19, %v3134_v12 }
 0x24a   : > { %v1022_v42 = vadd.f32 %v2554_v40, %v3322_v34  ;;  %v1016_v43 = vpop.f32.mrb[15].mxu0  ;;  %v1215_v40 = vadd.f32 %v3344_v21, %v3207_v46 }
 0x24b   : > { %v1017_v48 = vadd.f32 %v3322_v34, %v1016_v43  ;;  %2599 = vmatprep.subr.bf16.mxu0 %v1457_v39  ;;  %2737 = vmatprep.subr.bf16.mxu1 %v1457_v39  ;;  %v2315_v34 = vpop.f32.mrb[11].mxu1  ;;  %v1473_v22 = vpop.trf.xlu1 }
 0x24c   : > { %2600 = vmatpush3.bf16.msra.mxu0 %v1457_v39  ;;  %2745 = vmatpush3.bf16.msra.mxu1 %v1457_v39  ;;  %v3354_v1 = vadd.f32 %v2315_v34, %v2314_v62  ;;  %v2317_v9 = vpop.f32.mrb[12].mxu1  ;;  %v1503_v25 = vpop.trf.xlu0 }
 0x24d   : > { %v1458_v53 = vpack.c.bf16 %v1022_v42, %v1017_v48  ;;  %v2318_v7 = vpop.f32.mrb[13].mxu1  ;;  %v2573_v39 = vpop.f32.mrb[16].mxu0 }
 0x24e   : > { %v2319_v11 = vadd.f32 %v2318_v7, %v2317_v9  ;;  %v2320_v14 = vpop.f32.mrb[14].mxu1  ;;  %v1308_v41 = vpop.f32.mrb[17].mxu0  ;;  %v1317_v42 = vadd.f32 %v2573_v39, %v1220_v33 }
 0x24f   : > { %2601 = vmatprep.subr.bf16.mxu0 %v1458_v53  ;;  %2738 = vmatprep.subr.bf16.mxu1 %v1458_v53  ;;  %v1309_v47 = vadd.f32 %v1308_v41, %v1212_v35  ;;  %v2574_v48 = vpop.f32.mrb[18].mxu0 }
 0x250   : > { %2602 = vmatpush3.bf16.msra.mxu0 %v1458_v53  ;;  %2746 = vmatpush3.bf16.msra.mxu1 %v1458_v53  ;;  %v1504_v38 = vpop.trf.xlu0  ;;  %v1311_v45 = vpop.f32.mrb[19].mxu0  ;;  %v1373_v49 = vmax.f32 %v1317_v42, 0.0 }
 0x252   : > { %1389 = vst [vmem:[%s2862_s15 + $0x10] sm:$0xff] %v1373_v49 }
 0x253   : > { %2604 = vmatmul.mubr.bf16.vlgmr.msra.gmra.mrb[32].mxu0 %v1468_v4  ;;  %2628 = vmatmul.mubr.bf16.vlgmr.msra.gmra.mrb[32].mxu1 %v3328_v44  ;;  %v2321_v4 = vpop.f32.mrb[15].mxu1 }
 0x254   : > { %2607 = vmatprep.mubr.bf16.mxu0 %v1469_v36  ;;  %2631 = vmatprep.mubr.bf16.mxu1 %v3333_v58  ;;  %v2322_v44 = vadd.f32 %v2321_v4, %v2320_v14  ;;  %v2323_v24 = vpop.f32.mrb[16].mxu1  ;;  %v1474_v36 = vpop.trf.xlu1 }
 0x255   : > { %v2324_v58 = vpop.f32.mrb[17].mxu1  ;;  %v1505_v34 = vpop.trf.xlu0 }
 0x256   : > { %v3357_v27 = vadd.f32 %v2324_v58, %v2323_v24  ;;  %v2326_v28 = vpop.f32.mrb[18].mxu1  ;;  %v1239_v62 = vadd.f32 %v2322_v44, %v3252_v3 }
 0x257   : > { %v2327_v32 = vpop.f32.mrb[19].mxu1 }
 0x258   : > { %v1244_v24 = vadd.f32 %v3357_v27, %v3257_v6 }
 0x259   : > { %v1506_v58 = vpop.trf.xlu0 }
 0x25b   : > { %2608 = vmatmul.mubr.bf16.gmra.mrb[36].mxu0 %v1470_v54  ;;  %2632 = vmatmul.mubr.bf16.gmra.mrb[36].mxu1 %v3338_v5  ;;  %v3360_v5 = vadd.f32 %v2327_v32, %v2326_v28  ;;  %v1236_v54 = vadd.f32 %v2319_v11, %v3246_v0 }
 0x25c   : > { %2611 = vmatprep.mubr.bf16.mxu0 %v1471_v63  ;;  %2635 = vmatprep.mubr.bf16.mxu1 %v1499_v37  ;;  %v1223_v37 = vadd.f32 %v2310_v51, %v3221_v52  ;;  %v2329_v43 = vpop.f32.mrb[20].mxu1  ;;  %v1371_v52 = vmax.f32 %v1309_v47, 0.0  ;;  %v1312_v51 = vadd.f32 %v1311_v45, %v1215_v40  ;;  %v2577_v63 = vpop.f32.mrb[20].mxu0 }
 0x25d   : > { %v2330_v50 = vpop.f32.mrb[21].mxu1  ;;  %v1333_v9 = vadd.f32 %v2577_v63, %v1236_v54 }
 0x25e   : > { %v1320_v53 = vadd.f32 %v2574_v48, %v1223_v37  ;;  %v2331_v12 = vadd.f32 %v2330_v50, %v2329_v43  ;;  %v2332_v19 = vpop.f32.mrb[22].mxu1  ;;  %1387 = vst [vmem:[%s2862_s15] sm:$0xff] %v1371_v52  ;;  %v1372_v56 = vmax.f32 %v1312_v51, 0.0 }
 0x25f   : > { %v2333_v46 = vpop.f32.mrb[23].mxu1 }
 0x260   : > { %v1374_v21 = vmax.f32 %v1320_v53, 0.0  ;;  %1388 = vst [vmem:[%s2862_s15 + $0x8] sm:$0xff] %v1372_v56  ;;  %v1252_v44 = vadd.f32 %v2331_v12, %v3266_v13 }
 0x262   : > { %1390 = vst [vmem:[%s2862_s15 + $0x18] sm:$0xff] %v1374_v21 }
 0x263   : > { %2612 = vmatmul.mubr.bf16.gmra.mrb[40].mxu0 %v1472_v10  ;;  %2636 = vmatmul.mubr.bf16.gmra.mrb[40].mxu1 %v1500_v55  ;;  %v2334_v55 = vadd.f32 %v2333_v46, %v2332_v19 }
 0x264   : > { %2615 = vmatprep.mubr.bf16.mxu0 %v1473_v22  ;;  %2639 = vmatprep.mubr.bf16.mxu1 %v1501_v2  ;;  %v1324_v2 = vpop.f32.mrb[21].mxu0  ;;  %v2335_v7 = vpop.f32.mrb[24].mxu1 }
 0x265   : > { %v1325_v0 = vadd.f32 %v1324_v2, %v1228_v59  ;;  %v2578_v10 = vpop.f32.mrb[22].mxu0  ;;  %v2336_v11 = vpop.f32.mrb[25].mxu1  ;;  %v1405_v59 = vld [vmem:[#allocation3 + $0x10] sm:$0xff] }
 0x266   : > { %v1327_v14 = vpop.f32.mrb[23].mxu0  ;;  %v1336_v57 = vadd.f32 %v2578_v10, %v1239_v62  ;;  %v2337_v60 = vadd.f32 %v2336_v11, %v2335_v7  ;;  %v2338_v3 = vpop.f32.mrb[26].mxu1  ;;  %v1429_v62 = vld [vmem:[#allocation3 + $0xd0] sm:$0xff]  ;;  %v1428_v11 = vld [vmem:[#allocation3 + $0xc8] sm:$0xff] }
 0x267   : > { %v1375_v4 = vmax.f32 %v1325_v0, 0.0 }
 0x269   : > { %1391 = vst [vmem:[%s2862_s15 + $0x20] sm:$0xff] %v1375_v4 }
 0x26b   : > { %2616 = vmatmul.mubr.bf16.gmra.mrb[44].mxu0 %v1474_v36  ;;  %2640 = vmatmul.mubr.bf16.gmra.mrb[44].mxu1 %v1502_v16  ;;  %v1377_v16 = vmax.f32 %v1333_v9, 0.0  ;;  %v1430_v9 = vld [vmem:[#allocation3 + $0xd8] sm:$0xff] }
 0x26c   : > { %2619 = vmatprep.mubr.bf16.mxu0 %v3311_v26  ;;  %2643 = vmatprep.mubr.bf16.mxu1 %v1503_v25  ;;  %v1231_v26 = vadd.f32 %v3354_v1, %v3239_v61  ;;  %v1378_v1 = vmax.f32 %v1336_v57, 0.0  ;;  %v1255_v25 = vadd.f32 %v2334_v55, %v3271_v15 }
 0x26d   : > { %1393 = vst [vmem:[%s2862_s15 + $0x30] sm:$0xff] %v1377_v16 }
 0x26e   : > { %v1328_v61 = vadd.f32 %v1327_v14, %v1231_v26  ;;  %1394 = vst [vmem:[%s2862_s15 + $0x38] sm:$0xff] %v1378_v1  ;;  %v1406_v26 = vld [vmem:[#allocation3 + $0x18] sm:$0xff] }
 0x270   : > { %v1376_v22 = vmax.f32 %v1328_v61, 0.0 }
 0x272   : > { %1392 = vst [vmem:[%s2862_s15 + $0x28] sm:$0xff] %v1376_v22 }
 0x273   : > { %2620 = vmatmul.mubr.bf16.gmra.mrb[48].mxu0 %v3313_v29  ;;  %2644 = vmatmul.mubr.bf16.gmra.mrb[48].mxu1 %v1504_v38  ;;  %v2581_v29 = vpop.f32.mrb[24].mxu0 }
 0x274   : > { %2623 = vmatprep.mubr.bf16.mxu0 %v3315_v30  ;;  %2647 = vmatprep.mubr.bf16.mxu1 %v1505_v34  ;;  %v1247_v30 = vadd.f32 %v3360_v5, %v3262_v8  ;;  %v1340_v28 = vpop.f32.mrb[25].mxu0  ;;  %v1349_v32 = vadd.f32 %v2581_v29, %v1252_v44  ;;  %v1260_v5 = vadd.f32 %v2337_v60, %v3275_v17  ;;  %v1427_v34 = vld [vmem:[#allocation3 + $0xc0] sm:$0xff] }
 0x275   : > { %v1341_v13 = vadd.f32 %v1340_v28, %v1244_v24  ;;  %v2582_v33 = vpop.f32.mrb[26].mxu0  ;;  %v1409_v24 = vld [vmem:[#allocation3 + $0x30] sm:$0xff]  ;;  %v1407_v29 = vld [vmem:[#allocation3 + $0x20] sm:$0xff]  ;;  %v1410_v28 = vld [vmem:[#allocation3 + $0x38] sm:$0xff] }
 0x276   : > { %v1343_v35 = vpop.f32.mrb[27].mxu0  ;;  %v1381_v36 = vmax.f32 %v1349_v32, 0.0  ;;  %v1352_v6 = vadd.f32 %v2582_v33, %v1255_v25  ;;  %v1433_v25 = vld [vmem:[#allocation3 + $0xf0] sm:$0xff] }
 0x277   : > { %v1379_v15 = vmax.f32 %v1341_v13, 0.0  ;;  %v1344_v27 = vadd.f32 %v1343_v35, %v1247_v30  ;;  %v2585_v38 = vpop.f32.mrb[28].mxu0  ;;  %v1431_v30 = vld [vmem:[#allocation3 + $0xe0] sm:$0xff]  ;;  %v1434_v13 = vld [vmem:[#allocation3 + $0xf8] sm:$0xff] }
 0x278   : > { %1397 = vst [vmem:[%s2862_s15 + $0x50] sm:$0xff] %v1381_v36  ;;  %v1382_v37 = vmax.f32 %v1352_v6, 0.0  ;;  %v1356_v39 = vpop.f32.mrb[29].mxu0  ;;  %v1408_v36 = vld [vmem:[#allocation3 + $0x28] sm:$0xff] }
 0x279   : > { %1395 = vst [vmem:[%s2862_s15 + $0x40] sm:$0xff] %v1379_v15  ;;  %v1380_v8 = vmax.f32 %v1344_v27, 0.0  ;;  %v2586_v40 = vpop.f32.mrb[30].mxu0  ;;  %v1357_v41 = vadd.f32 %v1356_v39, %v1260_v5  ;;  %v1432_v27 = vld [vmem:[#allocation3 + $0xe8] sm:$0xff] }
 0x27a   : > { %1398 = vst [vmem:[%s2862_s15 + $0x58] sm:$0xff] %v1382_v37  ;;  %v1359_v42 = vpop.f32.mrb[31].mxu0 }
 0x27b   : > { %2624 = vmatmul.mubr.bf16.gmra.mrb[52].mxu0 %v3317_v31  ;;  %2648 = vmatmul.mubr.bf16.gmra.mrb[52].mxu1 %v1506_v58  ;;  %1396 = vst [vmem:[%s2862_s15 + $0x48] sm:$0xff] %v1380_v8  ;;  %v1383_v43 = vmax.f32 %v1357_v41, 0.0  ;;  %v2339_v31 = vpop.f32.mrb[27].mxu1 }
 0x27c   : > { %v2340_v47 = vadd.f32 %v2339_v31, %v2338_v3  ;;  %v2341_v48 = vpop.f32.mrb[28].mxu1 }
 0x27d   : > { %1399 = vst [vmem:[%s2862_s15 + $0x60] sm:$0xff] %v1383_v43  ;;  %v2342_v50 = vpop.f32.mrb[29].mxu1 }
 0x27e   : > { %v1263_v45 = vadd.f32 %v2340_v47, %v3282_v20  ;;  %v2344_v49 = vpop.f32.mrb[30].mxu1  ;;  %v2343_v12 = vadd.f32 %v2342_v50, %v2341_v48  ;;  %v1403_v20 = vld [vmem:[#allocation3] sm:$0xff]  ;;  %v1413_v47 = vld [vmem:[#allocation3 + $0x50] sm:$0xff] }
 0x27f   : > { %v2345_v17 = vpop.f32.mrb[31].mxu1  ;;  %v1437_v48 = vld [vmem:[#allocation3 + $0x110] sm:$0xff]  ;;  %v1411_v50 = vld [vmem:[#allocation3 + $0x40] sm:$0xff] }
 0x280   : > { %v1360_v53 = vadd.f32 %v1359_v42, %v1263_v45  ;;  %v2346_v19 = vadd.f32 %v2345_v17, %v2344_v49  ;;  %v1268_v51 = vadd.f32 %v2343_v12, %v3286_v23  ;;  %v1404_v23 = vld [vmem:[#allocation3 + $0x8] sm:$0xff]  ;;  %v1435_v45 = vld [vmem:[#allocation3 + $0x100] sm:$0xff]  ;;  %v1414_v17 = vld [vmem:[#allocation3 + $0x58] sm:$0xff] }
 0x281   : > { %v1438_v12 = vld [vmem:[#allocation3 + $0x118] sm:$0xff] }
 0x282   : > { %v1384_v52 = vmax.f32 %v1360_v53, 0.0  ;;  %v1271_v46 = vadd.f32 %v2346_v19, %v3291_v18  ;;  %v1365_v21 = vadd.f32 %v2585_v38, %v1268_v51  ;;  %v1412_v51 = vld [vmem:[#allocation3 + $0x48] sm:$0xff] }
 0x284   : > { %1400 = vst [vmem:[%s2862_s15 + $0x68] sm:$0xff] %v1384_v52  ;;  %v1368_v54 = vadd.f32 %v2586_v40, %v1271_v46  ;;  %v1385_v55 = vmax.f32 %v1365_v21, 0.0 }
 0x286   : > { %v1386_v56 = vmax.f32 %v1368_v54, 0.0  ;;  %1401 = vst [vmem:[%s2862_s15 + $0x70] sm:$0xff] %v1385_v55  ;;  %v1436_v54 = vld [vmem:[#allocation3 + $0x108] sm:$0xff] }
 0x288   : > { %1402 = vst [vmem:[%s2862_s15 + $0x78] sm:$0xff] %v1386_v56 }
 0x326   : > { %v2605_v63 = vpop.f32.mrb[32].mxu0  ;;  %v2629_v2 = vpop.f32.mrb[32].mxu1 }
 0x327   : > { %v1734_v7 = vadd.f32 %v2605_v63, %v1405_v59  ;;  %v1541_v0 = vpop.f32.mrb[33].mxu0  ;;  %v1758_v10 = vadd.f32 %v2629_v2, %v1429_v62  ;;  %v1637_v18 = vpop.f32.mrb[33].mxu1 }
 0x328   : > { %v1732_v14 = vadd.f32 %v1541_v0, %v1403_v20  ;;  %v2606_v16 = vpop.f32.mrb[34].mxu0  ;;  %v1756_v57 = vadd.f32 %v1637_v18, %v1427_v34  ;;  %v2630_v60 = vpop.f32.mrb[34].mxu1  ;;  %v1441_v0 = vld [vmem:[#allocation3 + $0x130] sm:$0xff] }
 0x329   : > { %1782 = vst [vmem:[#allocation3 + $0x10] sm:$0xff] %v1734_v7  ;;  %v1735_v3 = vadd.f32 %v2606_v16, %v1406_v26  ;;  %v1544_v4 = vpop.f32.mrb[35].mxu0  ;;  %1806 = vst [vmem:[#allocation3 + $0xd0] sm:$0xff] %v1758_v10  ;;  %v1759_v61 = vadd.f32 %v2630_v60, %v1430_v9  ;;  %v1640_v1 = vpop.f32.mrb[35].mxu1  ;;  %v1417_v7 = vld [vmem:[#allocation3 + $0x70] sm:$0xff]  ;;  %v1439_v10 = vld [vmem:[#allocation3 + $0x120] sm:$0xff] }
 0x32a   : > { %1780 = vst [vmem:[#allocation3] sm:$0xff] %v1732_v14  ;;  %v1733_v44 = vadd.f32 %v1544_v4, %v1404_v23  ;;  %1804 = vst [vmem:[#allocation3 + $0xc0] sm:$0xff] %v1756_v57  ;;  %v1757_v22 = vadd.f32 %v1640_v1, %v1428_v11  ;;  %v1415_v23 = vld [vmem:[#allocation3 + $0x60] sm:$0xff]  ;;  %v1418_v11 = vld [vmem:[#allocation3 + $0x78] sm:$0xff] }
 0x32b   : > { %1783 = vst [vmem:[#allocation3 + $0x18] sm:$0xff] %v1735_v3  ;;  %1807 = vst [vmem:[#allocation3 + $0xd8] sm:$0xff] %v1759_v61  ;;  %v1442_v16 = vld [vmem:[#allocation3 + $0x138] sm:$0xff]  ;;  %v1416_v3 = vld [vmem:[#allocation3 + $0x68] sm:$0xff] }
 0x32c   : > { %1781 = vst [vmem:[#allocation3 + $0x8] sm:$0xff] %v1733_v44  ;;  %1805 = vst [vmem:[#allocation3 + $0xc8] sm:$0xff] %v1757_v22  ;;  %v1440_v1 = vld [vmem:[#allocation3 + $0x128] sm:$0xff] }
 0x32e   : > { %v2609_v58 = vpop.f32.mrb[36].mxu0  ;;  %v2633_v32 = vpop.f32.mrb[36].mxu1 }
 0x32f   : > { %v1738_v33 = vadd.f32 %v2609_v58, %v1409_v24  ;;  %v1557_v35 = vpop.f32.mrb[37].mxu0  ;;  %v1762_v6 = vadd.f32 %v2633_v32, %v1433_v25  ;;  %v1653_v15 = vpop.f32.mrb[37].mxu1 }
 0x330   : > { %v1736_v37 = vadd.f32 %v1557_v35, %v1407_v29  ;;  %v2610_v8 = vpop.f32.mrb[38].mxu0  ;;  %v1760_v5 = vadd.f32 %v1653_v15, %v1431_v30  ;;  %v2634_v38 = vpop.f32.mrb[38].mxu1  ;;  %v1445_v35 = vld [vmem:[#allocation3 + $0x150] sm:$0xff] }
 0x331   : > { %1786 = vst [vmem:[#allocation3 + $0x30] sm:$0xff] %v1738_v33  ;;  %v1739_v39 = vadd.f32 %v2610_v8, %v1410_v28  ;;  %v1560_v40 = vpop.f32.mrb[39].mxu0  ;;  %1810 = vst [vmem:[#allocation3 + $0xf0] sm:$0xff] %v1762_v6  ;;  %v1763_v41 = vadd.f32 %v2634_v38, %v1434_v13  ;;  %v1656_v42 = vpop.f32.mrb[39].mxu1  ;;  %v1421_v33 = vld [vmem:[#allocation3 + $0x90] sm:$0xff]  ;;  %v1443_v6 = vld [vmem:[#allocation3 + $0x140] sm:$0xff] }
 0x332   : > { %1784 = vst [vmem:[#allocation3 + $0x20] sm:$0xff] %v1736_v37  ;;  %v1737_v43 = vadd.f32 %v1560_v40, %v1408_v36  ;;  %1808 = vst [vmem:[#allocation3 + $0xe0] sm:$0xff] %v1760_v5  ;;  %v1761_v31 = vadd.f32 %v1656_v42, %v1432_v27  ;;  %v1419_v36 = vld [vmem:[#allocation3 + $0x80] sm:$0xff]  ;;  %v1422_v27 = vld [vmem:[#allocation3 + $0x98] sm:$0xff] }
 0x333   : > { %1787 = vst [vmem:[#allocation3 + $0x38] sm:$0xff] %v1739_v39  ;;  %1811 = vst [vmem:[#allocation3 + $0xf8] sm:$0xff] %v1763_v41  ;;  %v1446_v8 = vld [vmem:[#allocation3 + $0x158] sm:$0xff]  ;;  %v1420_v39 = vld [vmem:[#allocation3 + $0x88] sm:$0xff] }
 0x334   : > { %1785 = vst [vmem:[#allocation3 + $0x28] sm:$0xff] %v1737_v43  ;;  %1809 = vst [vmem:[#allocation3 + $0xe8] sm:$0xff] %v1761_v31  ;;  %v1444_v42 = vld [vmem:[#allocation3 + $0x148] sm:$0xff] }
 0x336   : > { %v2613_v49 = vpop.f32.mrb[40].mxu0  ;;  %v2637_v53 = vpop.f32.mrb[40].mxu1 }
 0x337   : > { %v1742_v19 = vadd.f32 %v2613_v49, %v1413_v47  ;;  %v1573_v52 = vpop.f32.mrb[41].mxu0  ;;  %v1766_v46 = vadd.f32 %v2637_v53, %v1437_v48  ;;  %v1669_v21 = vpop.f32.mrb[41].mxu1 }
 0x338   : > { %v1740_v55 = vadd.f32 %v1573_v52, %v1411_v50  ;;  %v2614_v56 = vpop.f32.mrb[42].mxu0  ;;  %v1764_v59 = vadd.f32 %v1669_v21, %v1435_v45  ;;  %v2638_v62 = vpop.f32.mrb[42].mxu1  ;;  %v1449_v52 = vld [vmem:[#allocation3 + $0x170] sm:$0xff] }
 0x339   : > { %1790 = vst [vmem:[#allocation3 + $0x50] sm:$0xff] %v1742_v19  ;;  %v1743_v20 = vadd.f32 %v2614_v56, %v1414_v17  ;;  %v1576_v34 = vpop.f32.mrb[43].mxu0  ;;  %1814 = vst [vmem:[#allocation3 + $0x110] sm:$0xff] %v1766_v46  ;;  %v1767_v63 = vadd.f32 %v2638_v62, %v1438_v12  ;;  %v1672_v26 = vpop.f32.mrb[43].mxu1  ;;  %v1425_v19 = vld [vmem:[#allocation3 + $0xb0] sm:$0xff]  ;;  %v1447_v46 = vld [vmem:[#allocation3 + $0x160] sm:$0xff] }
 0x33a   : > { %1788 = vst [vmem:[#allocation3 + $0x40] sm:$0xff] %v1740_v55  ;;  %v1741_v2 = vadd.f32 %v1576_v34, %v1412_v51  ;;  %1812 = vst [vmem:[#allocation3 + $0x100] sm:$0xff] %v1764_v59  ;;  %v1765_v9 = vadd.f32 %v1672_v26, %v1436_v54  ;;  %v1423_v51 = vld [vmem:[#allocation3 + $0xa0] sm:$0xff]  ;;  %v1426_v54 = vld [vmem:[#allocation3 + $0xb8] sm:$0xff] }
 0x33b   : > { %1791 = vst [vmem:[#allocation3 + $0x58] sm:$0xff] %v1743_v20  ;;  %1815 = vst [vmem:[#allocation3 + $0x118] sm:$0xff] %v1767_v63  ;;  %v1450_v56 = vld [vmem:[#allocation3 + $0x178] sm:$0xff]  ;;  %v1424_v20 = vld [vmem:[#allocation3 + $0xa8] sm:$0xff] }
 0x33c   : > { %1789 = vst [vmem:[#allocation3 + $0x48] sm:$0xff] %v1741_v2  ;;  %1813 = vst [vmem:[#allocation3 + $0x108] sm:$0xff] %v1765_v9  ;;  %v1448_v26 = vld [vmem:[#allocation3 + $0x168] sm:$0xff] }
 0x33e   : > { %v2617_v18 = vpop.f32.mrb[44].mxu0  ;;  %v2641_v14 = vpop.f32.mrb[44].mxu1 }
 0x33f   : > { %v1746_v57 = vadd.f32 %v2617_v18, %v1417_v7  ;;  %v1589_v60 = vpop.f32.mrb[45].mxu0  ;;  %v1770_v4 = vadd.f32 %v2641_v14, %v1441_v0  ;;  %v1685_v61 = vpop.f32.mrb[45].mxu1 }
 0x340   : > { %v1744_v44 = vadd.f32 %v1589_v60, %v1415_v23  ;;  %v2618_v22 = vpop.f32.mrb[46].mxu0  ;;  %v1768_v24 = vadd.f32 %v1685_v61, %v1439_v10  ;;  %v2642_v25 = vpop.f32.mrb[46].mxu1  ;;  %v1880_v60 = vld [vmem:[%s3697_s2] sm:$0xff] (!%p2184_p5)  ;;  %v1881_v61 = vld [vmem:[%s3697_s2 + $0x8] sm:$0xff] (!%p2184_p5) }
 0x341   : > { %1794 = vst [vmem:[#allocation3 + $0x70] sm:$0xff] %v1746_v57  ;;  %v1747_v29 = vadd.f32 %v2618_v22, %v1418_v11  ;;  %v1592_v30 = vpop.f32.mrb[47].mxu0  ;;  %1818 = vst [vmem:[#allocation3 + $0x130] sm:$0xff] %v1770_v4  ;;  %v1771_v58 = vadd.f32 %v2642_v25, %v1442_v16  ;;  %v1688_v28 = vpop.f32.mrb[47].mxu1  ;;  %v1832_v57 = vld [vmem:[#allocation3] sm:$0xff] (!%p2184_p5)  ;;  %v1835_v25 = vld [vmem:[#allocation3 + $0x18] sm:$0xff] (!%p2184_p5) }
 0x342   : > { %1792 = vst [vmem:[#allocation3 + $0x60] sm:$0xff] %v1744_v44  ;;  %v1745_v32 = vadd.f32 %v1592_v30, %v1416_v3  ;;  %1816 = vst [vmem:[#allocation3 + $0x120] sm:$0xff] %v1768_v24  ;;  %v1769_v13 = vadd.f32 %v1688_v28, %v1440_v1  ;;  %v1833_v3 = vld [vmem:[#allocation3 + $0x8] sm:$0xff] (!%p2184_p5)  ;;  %v1928_v4 = vadd.f32 (!%p2184_p5), %v1880_v60, %v1832_v57  ;;  %v1834_v1 = vld [vmem:[#allocation3 + $0x10] sm:$0xff] (!%p2184_p5) }
 0x343   : > { %1795 = vst [vmem:[#allocation3 + $0x78] sm:$0xff] %v1747_v29  ;;  %1819 = vst [vmem:[#allocation3 + $0x138] sm:$0xff] %v1771_v58  ;;  %v1882_v44 = vld [vmem:[%s3697_s2 + $0x10] sm:$0xff] (!%p2184_p5)  ;;  %v1929_v22 = vadd.f32 (!%p2184_p5), %v1881_v61, %v1833_v3  ;;  %v1883_v29 = vld [vmem:[%s3697_s2 + $0x18] sm:$0xff] (!%p2184_p5) }
 0x344   : > { %1793 = vst [vmem:[#allocation3 + $0x68] sm:$0xff] %v1745_v32  ;;  %1817 = vst [vmem:[#allocation3 + $0x128] sm:$0xff] %v1769_v13  ;;  %v1930_v24 = vadd.f32 (!%p2184_p5), %v1882_v44, %v1834_v1  ;;  %v1836_v30 = vld [vmem:[#allocation3 + $0x20] sm:$0xff] (!%p2184_p5)  ;;  %v1976_v58 = vmax.f32 (!%p2184_p5), %v1928_v4, 0.0  ;;  %v1931_v28 = vadd.f32 (!%p2184_p5), %v1883_v29, %v1835_v25  ;;  %v1837_v13 = vld [vmem:[#allocation3 + $0x28] sm:$0xff] (!%p2184_p5) }
 0x345   : > { %v1884_v32 = vld [vmem:[%s3697_s2 + $0x20] sm:$0xff] (!%p2184_p5)  ;;  %v1897_v57 = vld [vmem:[%s3697_s2 + $0x88] sm:$0xff] (!%p2184_p5)  ;;  %v1898_v44 = vld [vmem:[%s3697_s2 + $0x90] sm:$0xff] (!%p2184_p5) }
 0x346   : > { %v2621_v15 = vpop.f32.mrb[48].mxu0  ;;  %v2645_v37 = vpop.f32.mrb[48].mxu1  ;;  %2024 = vst [vmem:[%s3703_s8] sm:$0xff] (!%p2184_p5), %v1976_v58  ;;  %v1899_v29 = vld [vmem:[%s3697_s2 + $0x98] sm:$0xff] (!%p2184_p5)  ;;  %v1900_v58 = vld [vmem:[%s3697_s2 + $0xa0] sm:$0xff] (!%p2184_p5) }
 0x347   : > { %v1750_v5 = vadd.f32 %v2621_v15, %v1421_v33  ;;  %v1605_v38 = vpop.f32.mrb[49].mxu0  ;;  %v1774_v40 = vadd.f32 %v2645_v37, %v1445_v35  ;;  %v1701_v41 = vpop.f32.mrb[49].mxu1  ;;  %v1885_v33 = vld [vmem:[%s3697_s2 + $0x28] sm:$0xff] (!%p2184_p5)  ;;  %v1977_v35 = vmax.f32 (!%p2184_p5), %v1929_v22, 0.0  ;;  %v1886_v37 = vld [vmem:[%s3697_s2 + $0x30] sm:$0xff] (!%p2184_p5) }
 0x348   : > { %v1748_v43 = vadd.f32 %v1605_v38, %v1419_v36  ;;  %v2622_v31 = vpop.f32.mrb[50].mxu0  ;;  %v1772_v47 = vadd.f32 %v1701_v41, %v1443_v6  ;;  %v2646_v48 = vpop.f32.mrb[50].mxu1  ;;  %v1978_v36 = vmax.f32 (!%p2184_p5), %v1930_v24, 0.0  ;;  %v1932_v6 = vadd.f32 (!%p2184_p5), %v1884_v32, %v1836_v30  ;;  %v1888_v41 = vld [vmem:[%s3697_s2 + $0x40] sm:$0xff] (!%p2184_p5) }
 0x349   : > { %1798 = vst [vmem:[#allocation3 + $0x90] sm:$0xff] %v1750_v5  ;;  %v1751_v50 = vadd.f32 %v2622_v31, %v1422_v27  ;;  %v1608_v45 = vpop.f32.mrb[51].mxu0  ;;  %1822 = vst [vmem:[#allocation3 + $0x150] sm:$0xff] %v1774_v40  ;;  %v1775_v49 = vadd.f32 %v2646_v48, %v1446_v8  ;;  %v1704_v17 = vpop.f32.mrb[51].mxu1  ;;  %v1933_v15 = vadd.f32 (!%p2184_p5), %v1885_v33, %v1837_v13  ;;  %v1838_v27 = vld [vmem:[#allocation3 + $0x30] sm:$0xff] (!%p2184_p5)  ;;  %v1839_v8 = vld [vmem:[#allocation3 + $0x38] sm:$0xff] (!%p2184_p5) }
 0x34a   : > { %1796 = vst [vmem:[#allocation3 + $0x80] sm:$0xff] %v1748_v43  ;;  %v1749_v53 = vadd.f32 %v1608_v45, %v1420_v39  ;;  %1820 = vst [vmem:[#allocation3 + $0x140] sm:$0xff] %v1772_v47  ;;  %v1773_v12 = vadd.f32 %v1704_v17, %v1444_v42  ;;  %v1979_v5 = vmax.f32 (!%p2184_p5), %v1931_v28, 0.0  ;;  %v1934_v38 = vadd.f32 (!%p2184_p5), %v1886_v37, %v1838_v27  ;;  %v1887_v39 = vld [vmem:[%s3697_s2 + $0x38] sm:$0xff] (!%p2184_p5)  ;;  %v1840_v40 = vld [vmem:[#allocation3 + $0x40] sm:$0xff] (!%p2184_p5) }
 0x34b   : > { %1799 = vst [vmem:[#allocation3 + $0x98] sm:$0xff] %v1751_v50  ;;  %1823 = vst [vmem:[#allocation3 + $0x158] sm:$0xff] %v1775_v49  ;;  %v1980_v42 = vmax.f32 (!%p2184_p5), %v1932_v6, 0.0  ;;  %v1981_v43 = vmax.f32 (!%p2184_p5), %v1933_v15, 0.0  ;;  %v1935_v31 = vadd.f32 (!%p2184_p5), %v1887_v39, %v1839_v8  ;;  %v1936_v47 = vadd.f32 (!%p2184_p5), %v1888_v41, %v1840_v40  ;;  %v1841_v48 = vld [vmem:[#allocation3 + $0x48] sm:$0xff] (!%p2184_p5)  ;;  %v1842_v45 = vld [vmem:[#allocation3 + $0x50] sm:$0xff] (!%p2184_p5) }
 0x34c   : > { %1797 = vst [vmem:[#allocation3 + $0x88] sm:$0xff] %v1749_v53  ;;  %1821 = vst [vmem:[#allocation3 + $0x148] sm:$0xff] %v1773_v12  ;;  %v1889_v50 = vld [vmem:[%s3697_s2 + $0x48] sm:$0xff] (!%p2184_p5)  ;;  %v1982_v49 = vmax.f32 (!%p2184_p5), %v1934_v38, 0.0  ;;  %v1890_v53 = vld [vmem:[%s3697_s2 + $0x50] sm:$0xff] (!%p2184_p5) }
 0x34d   : > { %2025 = vst [vmem:[%s3703_s8 + $0x8] sm:$0xff] (!%p2184_p5), %v1977_v35  ;;  %2026 = vst [vmem:[%s3703_s8 + $0x10] sm:$0xff] (!%p2184_p5), %v1978_v36  ;;  %v1937_v17 = vadd.f32 (!%p2184_p5), %v1889_v50, %v1841_v48  ;;  %v1843_v12 = vld [vmem:[#allocation3 + $0x58] sm:$0xff] (!%p2184_p5)  ;;  %v1901_v36 = vld [vmem:[%s3697_s2 + $0xa8] sm:$0xff] (!%p2184_p5) }
 0x34e   : > { %v2625_v21 = vpop.f32.mrb[52].mxu0  ;;  %v2649_v55 = vpop.f32.mrb[52].mxu1  ;;  %1831 = sbr.rel (%p2184_p5) target bundleno = 881 (0x371), region = 56  ;;  %2027 = vst [vmem:[%s3703_s8 + $0x18] sm:$0xff] (!%p2184_p5), %v1979_v5  ;;  %2028 = vst [vmem:[%s3703_s8 + $0x20] sm:$0xff] (!%p2184_p5), %v1980_v42  ;;  %v1902_v37 = vld [vmem:[%s3697_s2 + $0xb0] sm:$0xff] (!%p2184_p5) }
 0x34f   : > { %v1754_v59 = vadd.f32 %v2625_v21, %v1425_v19  ;;  %v1621_v62 = vpop.f32.mrb[53].mxu0  ;;  %v1778_v34 = vadd.f32 %v2649_v55, %v1449_v52  ;;  %v1717_v63 = vpop.f32.mrb[53].mxu1  ;;  %v1891_v19 = vld [vmem:[%s3697_s2 + $0x58] sm:$0xff] (!%p2184_p5)  ;;  %2029 = vst [vmem:[%s3703_s8 + $0x28] sm:$0xff] (!%p2184_p5), %v1981_v43  ;;  %v1983_v52 = vmax.f32 (!%p2184_p5), %v1935_v31, 0.0  ;;  %v1892_v55 = vld [vmem:[%s3697_s2 + $0x60] sm:$0xff] (!%p2184_p5) }
 0x350   : > { %v1752_v2 = vadd.f32 %v1621_v62, %v1423_v51  ;;  %v2626_v9 = vpop.f32.mrb[54].mxu0  ;;  %v1776_v7 = vadd.f32 %v1717_v63, %v1447_v46  ;;  %v2650_v0 = vpop.f32.mrb[54].mxu1  ;;  %v1984_v51 = vmax.f32 (!%p2184_p5), %v1936_v47, 0.0  ;;  %v1938_v46 = vadd.f32 (!%p2184_p5), %v1890_v53, %v1842_v45  ;;  %2030 = vst [vmem:[%s3703_s8 + $0x30] sm:$0xff] (!%p2184_p5), %v1982_v49  ;;  %v1894_v63 = vld [vmem:[%s3697_s2 + $0x70] sm:$0xff] (!%p2184_p5)  ;;  %v1903_v5 = vld [vmem:[%s3697_s2 + $0xb8] sm:$0xff] (!%p2184_p5) }
 0x351   : > { %1802 = vst [vmem:[#allocation3 + $0xb0] sm:$0xff] %v1754_v59  ;;  %v1755_v23 = vadd.f32 %v2626_v9, %v1426_v54  ;;  %v1624_v10 = vpop.f32.mrb[55].mxu0  ;;  %1826 = vst [vmem:[#allocation3 + $0x170] sm:$0xff] %v1778_v34  ;;  %v1779_v18 = vadd.f32 %v2650_v0, %v1450_v56  ;;  %v1720_v11 = vpop.f32.mrb[55].mxu1  ;;  %v1939_v21 = vadd.f32 (!%p2184_p5), %v1891_v19, %v1843_v12  ;;  %v1844_v54 = vld [vmem:[#allocation3 + $0x60] sm:$0xff] (!%p2184_p5)  ;;  %v1845_v56 = vld [vmem:[#allocation3 + $0x68] sm:$0xff] (!%p2184_p5) }
 0x352   : > { %1800 = vst [vmem:[#allocation3 + $0xa0] sm:$0xff] %v1752_v2  ;;  %v1753_v14 = vadd.f32 %v1624_v10, %v1424_v20  ;;  %1824 = vst [vmem:[#allocation3 + $0x160] sm:$0xff] %v1776_v7  ;;  %v1777_v16 = vadd.f32 %v1720_v11, %v1448_v26  ;;  %v1985_v59 = vmax.f32 (!%p2184_p5), %v1937_v17, 0.0  ;;  %v1940_v62 = vadd.f32 (!%p2184_p5), %v1892_v55, %v1844_v54  ;;  %v1893_v20 = vld [vmem:[%s3697_s2 + $0x68] sm:$0xff] (!%p2184_p5)  ;;  %v1846_v34 = vld [vmem:[#allocation3 + $0x70] sm:$0xff] (!%p2184_p5) }
 0x353   : > { %1803 = vst [vmem:[#allocation3 + $0xb8] sm:$0xff] %v1755_v23  ;;  %1827 = vst [vmem:[#allocation3 + $0x178] sm:$0xff] %v1779_v18  ;;  %v1986_v26 = vmax.f32 (!%p2184_p5), %v1938_v46, 0.0  ;;  %v1987_v2 = vmax.f32 (!%p2184_p5), %v1939_v21, 0.0  ;;  %v1941_v9 = vadd.f32 (!%p2184_p5), %v1893_v20, %v1845_v56  ;;  %v1942_v7 = vadd.f32 (!%p2184_p5), %v1894_v63, %v1846_v34  ;;  %v1847_v0 = vld [vmem:[#allocation3 + $0x78] sm:$0xff] (!%p2184_p5)  ;;  %v1848_v10 = vld [vmem:[#allocation3 + $0x80] sm:$0xff] (!%p2184_p5) }
 0x354   : > { %1801 = vst [vmem:[#allocation3 + $0xa8] sm:$0xff] %v1753_v14  ;;  %1825 = vst [vmem:[#allocation3 + $0x168] sm:$0xff] %v1777_v16  ;;  %v1895_v23 = vld [vmem:[%s3697_s2 + $0x78] sm:$0xff] (!%p2184_p5)  ;;  %v1988_v18 = vmax.f32 (!%p2184_p5), %v1940_v62, 0.0  ;;  %v1896_v14 = vld [vmem:[%s3697_s2 + $0x80] sm:$0xff] (!%p2184_p5) }
 0x355   : > { %2031 = vst [vmem:[%s3703_s8 + $0x38] sm:$0xff] %v1983_v52  ;;  %2032 = vst [vmem:[%s3703_s8 + $0x40] sm:$0xff] %v1984_v51  ;;  %v1943_v11 = vadd.f32 %v1895_v23, %v1847_v0  ;;  %v1849_v16 = vld [vmem:[#allocation3 + $0x88] sm:$0xff]  ;;  %v1989_v60 = vmax.f32 %v1941_v9, 0.0  ;;  %v1990_v3 = vmax.f32 %v1942_v7, 0.0  ;;  %v1944_v4 = vadd.f32 %v1896_v14, %v1848_v10  ;;  %v1850_v1 = vld [vmem:[#allocation3 + $0x90] sm:$0xff] }
 0x356   : > { %2033 = vst [vmem:[%s3703_s8 + $0x48] sm:$0xff] %v1985_v59  ;;  %2034 = vst [vmem:[%s3703_s8 + $0x50] sm:$0xff] %v1986_v26  ;;  %v1945_v61 = vadd.f32 %v1897_v57, %v1849_v16  ;;  %v1851_v22 = vld [vmem:[#allocation3 + $0x98] sm:$0xff]  ;;  %v1946_v25 = vadd.f32 %v1898_v44, %v1850_v1  ;;  %v1856_v42 = vld [vmem:[#allocation3 + $0xc0] sm:$0xff] }
 0x357   : > { %2035 = vst [vmem:[%s3703_s8 + $0x58] sm:$0xff] %v1987_v2  ;;  %2036 = vst [vmem:[%s3703_s8 + $0x60] sm:$0xff] %v1988_v18  ;;  %v1991_v24 = vmax.f32 %v1943_v11, 0.0  ;;  %v1992_v28 = vmax.f32 %v1944_v4, 0.0  ;;  %v1947_v13 = vadd.f32 %v1899_v29, %v1851_v22  ;;  %v1904_v43 = vld [vmem:[%s3697_s2 + $0xc0] sm:$0xff]  ;;  %v1857_v31 = vld [vmem:[#allocation3 + $0xc8] sm:$0xff] }
 0x358   : > { %2037 = vst [vmem:[%s3703_s8 + $0x68] sm:$0xff] %v1989_v60  ;;  %2038 = vst [vmem:[%s3703_s8 + $0x70] sm:$0xff] %v1990_v3  ;;  %v1993_v32 = vmax.f32 %v1945_v61, 0.0  ;;  %v1854_v6 = vld [vmem:[#allocation3 + $0xb0] sm:$0xff]  ;;  %v1994_v15 = vmax.f32 %v1946_v25, 0.0  ;;  %v1952_v48 = vadd.f32 %v1904_v43, %v1856_v42  ;;  %v1905_v50 = vld [vmem:[%s3697_s2 + $0xc8] sm:$0xff] }
 0x359   : > { %v1852_v30 = vld [vmem:[#allocation3 + $0xa0] sm:$0xff]  ;;  %2039 = vst [vmem:[%s3703_s8 + $0x78] sm:$0xff] %v1991_v24  ;;  %2040 = vst [vmem:[%s3703_s8 + $0x80] sm:$0xff] %v1992_v28  ;;  %v1995_v38 = vmax.f32 %v1947_v13, 0.0  ;;  %v1950_v40 = vadd.f32 %v1902_v37, %v1854_v6  ;;  %v1858_v45 = vld [vmem:[#allocation3 + $0xd0] sm:$0xff]  ;;  %v1953_v12 = vadd.f32 %v1905_v50, %v1857_v31 }
 0x35a   : > { %v1948_v33 = vadd.f32 %v1900_v58, %v1852_v30  ;;  %v1855_v8 = vld [vmem:[#allocation3 + $0xb8] sm:$0xff]  ;;  %2041 = vst [vmem:[%s3703_s8 + $0x88] sm:$0xff] %v1993_v32  ;;  %2042 = vst [vmem:[%s3703_s8 + $0x90] sm:$0xff] %v1994_v15  ;;  %v1906_v49 = vld [vmem:[%s3697_s2 + $0xd0] sm:$0xff]  ;;  %v2000_v21 = vmax.f32 %v1952_v48, 0.0 }
 0x35b   : > { %v1853_v35 = vld [vmem:[#allocation3 + $0xa8] sm:$0xff]  ;;  %v1951_v41 = vadd.f32 %v1903_v5, %v1855_v8  ;;  %2043 = vst [vmem:[%s3703_s8 + $0x98] sm:$0xff] %v1995_v38  ;;  %v1998_v17 = vmax.f32 %v1950_v40, 0.0  ;;  %v1954_v19 = vadd.f32 %v1906_v49, %v1858_v45  ;;  %v1859_v52 = vld [vmem:[#allocation3 + $0xd8] sm:$0xff]  ;;  %v1860_v46 = vld [vmem:[#allocation3 + $0xe0] sm:$0xff]  ;;  %v2001_v62 = vmax.f32 %v1953_v12, 0.0 }
 0x35c   : > { %v1949_v27 = vadd.f32 %v1901_v36, %v1853_v35  ;;  %v1996_v39 = vmax.f32 %v1948_v33, 0.0  ;;  %v1907_v51 = vld [vmem:[%s3697_s2 + $0xd8] sm:$0xff]  ;;  %v1908_v55 = vld [vmem:[%s3697_s2 + $0xe0] sm:$0xff]  ;;  %v1861_v56 = vld [vmem:[#allocation3 + $0xe8] sm:$0xff]  ;;  %2048 = vst [vmem:[%s3703_s8 + $0xc0] sm:$0xff] %v2000_v21 }
 0x35d   : > { %v1999_v53 = vmax.f32 %v1951_v41, 0.0  ;;  %v1955_v54 = vadd.f32 %v1907_v51, %v1859_v52  ;;  %v1909_v59 = vld [vmem:[%s3697_s2 + $0xe8] sm:$0xff]  ;;  %2046 = vst [vmem:[%s3703_s8 + $0xb0] sm:$0xff] %v1998_v17  ;;  %v2002_v20 = vmax.f32 %v1954_v19, 0.0  ;;  %v1956_v34 = vadd.f32 %v1908_v55, %v1860_v46  ;;  %v1862_v26 = vld [vmem:[#allocation3 + $0xf0] sm:$0xff]  ;;  %v1863_v9 = vld [vmem:[#allocation3 + $0xf8] sm:$0xff] }
 0x35e   : > { %v1997_v47 = vmax.f32 %v1949_v27, 0.0  ;;  %2044 = vst [vmem:[%s3703_s8 + $0xa0] sm:$0xff] %v1996_v39  ;;  %v1957_v63 = vadd.f32 %v1909_v59, %v1861_v56  ;;  %v1910_v2 = vld [vmem:[%s3697_s2 + $0xf0] sm:$0xff]  ;;  %v1911_v23 = vld [vmem:[%s3697_s2 + $0xf8] sm:$0xff]  ;;  %v1864_v10 = vld [vmem:[#allocation3 + $0x100] sm:$0xff] }
 0x35f   : > { %2047 = vst [vmem:[%s3703_s8 + $0xb8] sm:$0xff] %v1999_v53  ;;  %v2003_v7 = vmax.f32 %v1955_v54, 0.0  ;;  %v1958_v0 = vadd.f32 %v1910_v2, %v1862_v26  ;;  %v1912_v18 = vld [vmem:[%s3697_s2 + $0x100] sm:$0xff]  ;;  %2049 = vst [vmem:[%s3703_s8 + $0xc8] sm:$0xff] %v2001_v62  ;;  %v2004_v11 = vmax.f32 %v1956_v34, 0.0  ;;  %v1959_v16 = vadd.f32 %v1911_v23, %v1863_v9  ;;  %v1865_v60 = vld [vmem:[#allocation3 + $0x108] sm:$0xff] }
 0x360   : > { %2045 = vst [vmem:[%s3703_s8 + $0xa8] sm:$0xff] %v1997_v47  ;;  %2050 = vst [vmem:[%s3703_s8 + $0xd0] sm:$0xff] %v2002_v20  ;;  %v2005_v14 = vmax.f32 %v1957_v63, 0.0  ;;  %v1960_v57 = vadd.f32 %v1912_v18, %v1864_v10  ;;  %v1913_v3 = vld [vmem:[%s3697_s2 + $0x108] sm:$0xff]  ;;  %v1866_v4 = vld [vmem:[#allocation3 + $0x110] sm:$0xff] }
 0x361   : > { %2051 = vst [vmem:[%s3703_s8 + $0xd8] sm:$0xff] %v2003_v7  ;;  %v2006_v61 = vmax.f32 %v1958_v0, 0.0  ;;  %v1961_v1 = vadd.f32 %v1913_v3, %v1865_v60  ;;  %v1914_v44 = vld [vmem:[%s3697_s2 + $0x110] sm:$0xff]  ;;  %v1867_v22 = vld [vmem:[#allocation3 + $0x118] sm:$0xff]  ;;  %2052 = vst [vmem:[%s3703_s8 + $0xe0] sm:$0xff] %v2004_v11  ;;  %v2007_v25 = vmax.f32 %v1959_v16, 0.0 }
 0x362   : > { %v1915_v24 = vld [vmem:[%s3697_s2 + $0x118] sm:$0xff]  ;;  %2053 = vst [vmem:[%s3703_s8 + $0xe8] sm:$0xff] %v2005_v14  ;;  %v2008_v29 = vmax.f32 %v1960_v57, 0.0  ;;  %v1962_v30 = vadd.f32 %v1914_v44, %v1866_v4  ;;  %v1868_v28 = vld [vmem:[#allocation3 + $0x120] sm:$0xff]  ;;  %v1869_v13 = vld [vmem:[#allocation3 + $0x128] sm:$0xff] }
 0x363   : > { %v1963_v58 = vadd.f32 %v1915_v24, %v1867_v22  ;;  %v1916_v32 = vld [vmem:[%s3697_s2 + $0x120] sm:$0xff]  ;;  %2054 = vst [vmem:[%s3703_s8 + $0xf0] sm:$0xff] %v2006_v61  ;;  %v2009_v33 = vmax.f32 %v1961_v1, 0.0  ;;  %v1917_v36 = vld [vmem:[%s3697_s2 + $0x128] sm:$0xff]  ;;  %v1870_v6 = vld [vmem:[#allocation3 + $0x130] sm:$0xff] }
 0x364   : > { %v1964_v35 = vadd.f32 %v1916_v32, %v1868_v28  ;;  %v1918_v15 = vld [vmem:[%s3697_s2 + $0x130] sm:$0xff]  ;;  %2055 = vst [vmem:[%s3703_s8 + $0xf8] sm:$0xff] %v2007_v25  ;;  %2056 = vst [vmem:[%s3703_s8 + $0x100] sm:$0xff] %v2008_v29  ;;  %v2010_v27 = vmax.f32 %v1962_v30, 0.0  ;;  %v1965_v8 = vadd.f32 %v1917_v36, %v1869_v13  ;;  %v1871_v38 = vld [vmem:[#allocation3 + $0x138] sm:$0xff] }
 0x365   : > { %v2011_v37 = vmax.f32 %v1963_v58, 0.0  ;;  %v1966_v5 = vadd.f32 %v1918_v15, %v1870_v6  ;;  %v1919_v39 = vld [vmem:[%s3697_s2 + $0x138] sm:$0xff]  ;;  %v1872_v40 = vld [vmem:[#allocation3 + $0x140] sm:$0xff]  ;;  %2057 = vst [vmem:[%s3703_s8 + $0x108] sm:$0xff] %v2009_v33  ;;  %v1873_v31 = vld [vmem:[#allocation3 + $0x148] sm:$0xff] }
 0x366   : > { %v2012_v41 = vmax.f32 %v1964_v35, 0.0  ;;  %v1967_v42 = vadd.f32 %v1919_v39, %v1871_v38  ;;  %v1920_v43 = vld [vmem:[%s3697_s2 + $0x140] sm:$0xff]  ;;  %v1921_v47 = vld [vmem:[%s3697_s2 + $0x148] sm:$0xff]  ;;  %2058 = vst [vmem:[%s3703_s8 + $0x110] sm:$0xff] %v2010_v27  ;;  %v2013_v48 = vmax.f32 %v1965_v8, 0.0  ;;  %v1874_v17 = vld [vmem:[#allocation3 + $0x150] sm:$0xff] }
 0x367   : > { %2059 = vst [vmem:[%s3703_s8 + $0x118] sm:$0xff] %v2011_v37  ;;  %v2014_v50 = vmax.f32 %v1966_v5, 0.0  ;;  %v1968_v45 = vadd.f32 %v1920_v43, %v1872_v40  ;;  %v1969_v49 = vadd.f32 %v1921_v47, %v1873_v31  ;;  %v1922_v53 = vld [vmem:[%s3697_s2 + $0x150] sm:$0xff]  ;;  %v1875_v12 = vld [vmem:[#allocation3 + $0x158] sm:$0xff]  ;;  %v1876_v46 = vld [vmem:[#allocation3 + $0x160] sm:$0xff] }
 0x368   : > { %2060 = vst [vmem:[%s3703_s8 + $0x120] sm:$0xff] %v2012_v41  ;;  %v2015_v19 = vmax.f32 %v1967_v42, 0.0  ;;  %v1970_v52 = vadd.f32 %v1922_v53, %v1874_v17  ;;  %v1923_v51 = vld [vmem:[%s3697_s2 + $0x158] sm:$0xff]  ;;  %v1924_v21 = vld [vmem:[%s3697_s2 + $0x160] sm:$0xff]  ;;  %2061 = vst [vmem:[%s3703_s8 + $0x128] sm:$0xff] %v2013_v48 }
 0x369   : > { %2062 = vst [vmem:[%s3703_s8 + $0x130] sm:$0xff] %v2014_v50  ;;  %v2016_v54 = vmax.f32 %v1968_v45, 0.0  ;;  %v2017_v55 = vmax.f32 %v1969_v49, 0.0  ;;  %v1971_v56 = vadd.f32 %v1923_v51, %v1875_v12  ;;  %v1972_v59 = vadd.f32 %v1924_v21, %v1876_v46  ;;  %v1877_v62 = vld [vmem:[#allocation3 + $0x168] sm:$0xff]  ;;  %v1878_v34 = vld [vmem:[#allocation3 + $0x170] sm:$0xff]  ;;  %v1879_v9 = vld [vmem:[#allocation3 + $0x178] sm:$0xff] }
 0x36a   : > { %v1925_v20 = vld [vmem:[%s3697_s2 + $0x168] sm:$0xff]  ;;  %2063 = vst [vmem:[%s3703_s8 + $0x138] sm:$0xff] %v2015_v19  ;;  %v2018_v63 = vmax.f32 %v1970_v52, 0.0  ;;  %v1926_v2 = vld [vmem:[%s3697_s2 + $0x170] sm:$0xff]  ;;  %v1927_v7 = vld [vmem:[%s3697_s2 + $0x178] sm:$0xff] }
 0x36b   : > { %v1973_v26 = vadd.f32 %v1925_v20, %v1877_v62  ;;  %2064 = vst [vmem:[%s3703_s8 + $0x140] sm:$0xff] %v2016_v54  ;;  %2065 = vst [vmem:[%s3703_s8 + $0x148] sm:$0xff] %v2017_v55  ;;  %v2019_v0 = vmax.f32 %v1971_v56, 0.0  ;;  %v2020_v23 = vmax.f32 %v1972_v59, 0.0  ;;  %v1974_v10 = vadd.f32 %v1926_v2, %v1878_v34 }
 0x36c   : > { %v1975_v18 = vadd.f32 %v1927_v7, %v1879_v9  ;;  %2066 = vst [vmem:[%s3703_s8 + $0x150] sm:$0xff] %v2018_v63 }
 0x36d   : > { %v2021_v11 = vmax.f32 %v1973_v26, 0.0  ;;  %2067 = vst [vmem:[%s3703_s8 + $0x158] sm:$0xff] %v2019_v0  ;;  %2068 = vst [vmem:[%s3703_s8 + $0x160] sm:$0xff] %v2020_v23  ;;  %v2022_v14 = vmax.f32 %v1974_v10, 0.0 }
 0x36e   : > { %v2023_v16 = vmax.f32 %v1975_v18, 0.0 }
 0x36f   : > { %2069 = vst [vmem:[%s3703_s8 + $0x168] sm:$0xff] %v2021_v11  ;;  %2070 = vst [vmem:[%s3703_s8 + $0x170] sm:$0xff] %v2022_v14 }
 0x370   : > { %2071 = vst [vmem:[%s3703_s8 + $0x178] sm:$0xff] %v2023_v16 }
 0x371 PF: > { %s19_s27 = sadd.s32 1, %s2795_s27  }
 0x372   : > { %p16_p6 = scmp.ge.s32.totalorder %s19_s27, 4  }
 0x374   :  { %18 = sbr.rel (!%p16_p6) target bundleno = 1 (0x1), region = 97 }

</bundles_post_ra>
